<compile_context>
chip_gen: v7x
topology: tpu7x:2x2x1
jax: 0.10.0
libtpu: 0.0.40
codegen_flags: <defaults>
</compile_context>

<pallas_src>
import functools

import jax
import jax.numpy as jnp
from jax import lax
from jax.experimental import pallas as pl
from jax.experimental.pallas import tpu as pltpu


# ----------------------------- Pallas kernel -------------------------------

def convlstm_kernel(xh_ref, w_ref, b_ref, peep_ref, c_ref, out_ref, patch_ref, *,
                    H, W, K, Ch, Cpad, bb):
    # xh_ref   : (bb, H+2p, W+2p, Cpad)   padded, channel-concatenated x|h (bf16)
    # w_ref    : (K*K*Cpad, 4*Ch)         fused conv weights, gate order i,f,c,o (bf16)
    # b_ref    : (1, 4*Ch)                gate biases (f32)
    # peep_ref : (3*Ch, H*W)              [Wci ; Wcf ; Wco], channels on sublanes (f32)
    # c_ref    : (Ch, bb*H*W)             previous cell state, channels on sublanes (f32)
    # out_ref  : (2*Ch, bb*H*W)           packed [ch ; cc] output (f32), lane-dense
    # patch_ref: (bb*H*W, K*K*Cpad)       VMEM im2col scratch (bf16)
    HW = H * W

    # ---- phase 1: build the im2col patch once in VMEM ----------------------
    # Cpad is a multiple of 128, so every per-tap column block starts at a
    # 128-lane-aligned offset -> plain full-width stores, no lane rotates.
    for ib in range(bb):
        img = xh_ref[ib]                                        # (Hp, Wp, Cpad)
        for t in range(K * K):
            ky, kx = divmod(t, K)
            patch_ref[ib * HW:(ib + 1) * HW, t * Cpad:(t + 1) * Cpad] = (
                img[ky:ky + H, kx:kx + W, :].reshape(HW, Cpad))

    # ---- phase 2: one deep-contraction bf16 matmul, f32 accumulation -------
    acc = jnp.dot(patch_ref[...], w_ref[...],
                  preferred_element_type=jnp.float32)           # (bb*HW, 4*Ch)
    acc = acc + b_ref[...]                                      # fold in bias

    # ---- phase 3: gates + peephole, channels-on-sublane (HW on lanes) ------
    wif = peep_ref[0:2 * Ch, :]                                 # [Wci ; Wcf] (2Ch, HW)
    wco = peep_ref[2 * Ch:3 * Ch, :]                            # (Ch, HW)
    for ib in range(bb):
        a_t = acc[ib * HW:(ib + 1) * HW, :].T                   # (4*Ch, HW) full-lane
        c_t = c_ref[:, ib * HW:(ib + 1) * HW]                   # (Ch, HW)
        c_dup = jnp.concatenate([c_t, c_t], axis=0)             # (2*Ch, HW)
        # fused i/f sigmoid on one wide slab
        s_if = jax.nn.sigmoid(a_t[0:2 * Ch, :] + c_dup * wif)
        ci = s_if[0:Ch, :]
        cf = s_if[Ch:2 * Ch, :]
        cc = cf * c_t + ci * jnp.tanh(a_t[2 * Ch:3 * Ch, :])
        co = jax.nn.sigmoid(a_t[3 * Ch:4 * Ch, :] + cc * wco)
        ch = co * jnp.tanh(cc)
        # lane-dense store: (2*Ch, HW) slab, HW (=256 here) on lanes.
        out_ref[:, ib * HW:(ib + 1) * HW] = (
            jnp.concatenate([ch, cc], axis=0).astype(out_ref.dtype))


# ------------------------- one-time parameter prep ---------------------------

def prepare_convlstm_params(params, *, input_channels, hidden_channels,
                            kernel_size, height, width):
    """Hoisted per-model preprocessing (call once, reuse every timestep)."""
    Cin, Ch, K, H, W = input_channels, hidden_channels, kernel_size, height, width
    Ctot = Cin + Ch
    Cpad = ((Ctot + 127) // 128) * 128   # lane-aligned per-tap channel block

    def tap_w(wx_key, wh_key):
        wx = jnp.transpose(params[wx_key], (2, 3, 1, 0))        # (K, K, Cin, Ch)
        wh = jnp.transpose(params[wh_key], (2, 3, 1, 0))        # (K, K, Ch,  Ch)
        return jnp.concatenate([wx, wh], axis=2)                # (K, K, Ctot, Ch)

    w_cat = jnp.concatenate(
        [tap_w('Wxi', 'Whi'), tap_w('Wxf', 'Whf'),
         tap_w('Wxc', 'Whc'), tap_w('Wxo', 'Who')], axis=3)     # (K, K, Ctot, 4*Ch)
    # zero-pad the input-channel axis so every tap's column block in the
    # in-kernel im2col starts at a 128-lane-aligned offset.
    w_cat = jnp.pad(w_cat, ((0, 0), (0, 0), (0, Cpad - Ctot), (0, 0)))
    w_cat = w_cat.reshape(K * K * Cpad, 4 * Ch).astype(jnp.bfloat16)

    bias = jnp.concatenate(
        [params[k] for k in ('bxi', 'bxf', 'bxc', 'bxo')]
    ).reshape(1, 4 * Ch).astype(jnp.float32)

    # peephole weights already in the kernel's (channels, H*W) layout.
    peep_t = jnp.concatenate(
        [params['Wci'].reshape(Ch, H * W),
         params['Wcf'].reshape(Ch, H * W),
         params['Wco'].reshape(Ch, H * W)], axis=0).astype(jnp.float32)  # (3*Ch, HW)

    return w_cat, bias, peep_t


# ------------------------------- forward ------------------------------------

@functools.partial(jax.jit, static_argnames=("kernel_size",))
def conv_lstm_cell_forward(x, h, c, w_cat, bias, peep_t, *, kernel_size):
    """x, h, c in NHWC (f32). Returns (ch, cc) in NHWC, matching torch (ch, cc)."""
    B, H, W, Cin = x.shape
    Ch = h.shape[-1]
    K = kernel_size
    p = (K - 1) // 2
    Hp, Wp = H + 2 * p, W + 2 * p
    HW = H * W
    Ctot = Cin + Ch
    Cpad = w_cat.shape[0] // (K * K)

    # glue: channel-concat x|h, spatial pad, channel pad to Cpad, bf16 cast
    # (single fused pass over the activations).
    xh = jnp.concatenate([x, h], axis=-1)
    xh = jnp.pad(xh, ((0, 0), (p, p), (p, p), (0, Cpad - Ctot))).astype(jnp.bfloat16)

    # cell state in the kernel's channels-on-sublane layout (Ch, B*H*W).
    c_t = c.reshape(B * HW, Ch).T.astype(jnp.float32)

    # Batch blocking: biggest block that divides B while keeping >= 2 grid steps
    # (both TensorCores busy on 2-TC chips) and modest per-step VMEM.
    bb = 1
    for cand in range(1, min(B // 2, 8) + 1):
        if B % cand == 0:
            bb = cand
    n_steps = B // bb

    kern = functools.partial(convlstm_kernel,
                             H=H, W=W, K=K, Ch=Ch, Cpad=Cpad, bb=bb)

    out_t = pl.pallas_call(
        kern,
        out_shape=jax.ShapeDtypeStruct((2 * Ch, B * HW), jnp.float32),
        grid_spec=pltpu.PrefetchScalarGridSpec(
            num_scalar_prefetch=0,
            grid=(n_steps,),
            in_specs=[
                # padded x|h images for this batch block
                pl.BlockSpec((bb, Hp, Wp, Cpad), lambda b: (b, 0, 0, 0)),
                # fused conv weights / bias / peephole: constant index_map ->
                # fetched once, stay resident across the batch grid.
                pl.BlockSpec((K * K * Cpad, 4 * Ch), lambda b: (0, 0)),
                pl.BlockSpec((1, 4 * Ch), lambda b: (0, 0)),
                pl.BlockSpec((3 * Ch, HW), lambda b: (0, 0)),
                # previous cell state columns for this batch block
                pl.BlockSpec((Ch, bb * HW), lambda b: (0, b)),
            ],
            out_specs=pl.BlockSpec((2 * Ch, bb * HW), lambda b: (0, b)),
            scratch_shapes=[pltpu.VMEM((bb * HW, K * K * Cpad), jnp.bfloat16)],
        ),
        compiler_params=pltpu.CompilerParams(
            dimension_semantics=("parallel",)),
    )(xh, w_cat, bias, peep_t, c_t)

    # unpack the lane-dense (2*Ch, B*HW) slab back to NHWC.
    ch_out = out_t[:Ch].reshape(Ch, B, H, W).transpose(1, 2, 3, 0)
    cc_out = out_t[Ch:].reshape(Ch, B, H, W).transpose(1, 2, 3, 0)
    return ch_out, cc_out


# -------------------------- pure-JAX reference -------------------------------

def _conv_nhwc(a, w_torch, b=None):
    w = jnp.transpose(w_torch, (2, 3, 1, 0))  # (O,I,kh,kw) -> (kh,kw,I,O)
    out = lax.conv_general_dilated(
        a, w, window_strides=(1, 1), padding='SAME',
        dimension_numbers=('NHWC', 'HWIO', 'NHWC'))
    if b is not None:
        out = out + b.reshape(1, 1, 1, -1)
    return out


def conv_lstm_cell_reference(x, h, c, params):
    p = params
    wci = jnp.transpose(p['Wci'], (0, 2, 3, 1))
    wcf = jnp.transpose(p['Wcf'], (0, 2, 3, 1))
    wco = jnp.transpose(p['Wco'], (0, 2, 3, 1))
    ci = jax.nn.sigmoid(_conv_nhwc(x, p['Wxi'], p['bxi'])
                        + _conv_nhwc(h, p['Whi']) + c * wci)
    cf = jax.nn.sigmoid(_conv_nhwc(x, p['Wxf'], p['bxf'])
                        + _conv_nhwc(h, p['Whf']) + c * wcf)
    cc = cf * c + ci * jnp.tanh(_conv_nhwc(x, p['Wxc'], p['bxc'])
                                + _conv_nhwc(h, p['Whc']))
    co = jax.nn.sigmoid(_conv_nhwc(x, p['Wxo'], p['bxo'])
                        + _conv_nhwc(h, p['Who']) + cc * wco)
    ch = co * jnp.tanh(cc)
    return ch, cc


# --------------------------------- main --------------------------------------

if __name__ == "__main__":
    B, Cin, Ch, H, W, K = 2, 4, 32, 16, 16, 3
    dtype = jnp.float32

    key = jax.random.PRNGKey(0)
    keys = jax.random.split(key, 20)
    ki = iter(keys)

    def rnd(shape, scale=0.1):
        return jax.random.normal(next(ki), shape, dtype) * scale

    # Deterministic synthetic parameters (torch weight layouts).
    params = {
        'Wxi': rnd((Ch, Cin, K, K)), 'bxi': rnd((Ch,)),
        'Wxf': rnd((Ch, Cin, K, K)), 'bxf': rnd((Ch,)),
        'Wxc': rnd((Ch, Cin, K, K)), 'bxc': rnd((Ch,)),
        'Wxo': rnd((Ch, Cin, K, K)), 'bxo': rnd((Ch,)),
        'Whi': rnd((Ch, Ch, K, K)),
        'Whf': rnd((Ch, Ch, K, K)),
        'Whc': rnd((Ch, Ch, K, K)),
        'Who': rnd((Ch, Ch, K, K)),
        # peephole weights (torch zero-inits these in init_hidden; use small
        # random values here so the peephole path is exercised)
        'Wci': rnd((1, Ch, H, W)),
        'Wcf': rnd((1, Ch, H, W)),
        'Wco': rnd((1, Ch, H, W)),
    }

    x = jax.random.normal(next(ki), (B, H, W, Cin), dtype)
    h = jax.random.normal(next(ki), (B, H, W, Ch), dtype)
    c = jax.random.normal(next(ki), (B, H, W, Ch), dtype)

    # One-time weight preprocessing (reused across timesteps in a rollout).
    w_cat, bias, peep_t = prepare_convlstm_params(
        params, input_channels=Cin, hidden_channels=Ch,
        kernel_size=K, height=H, width=W)

    ch_out, cc_out = conv_lstm_cell_forward(
        x, h, c, w_cat, bias, peep_t, kernel_size=K)
    jax.block_until_ready((ch_out, cc_out))

    ch_ref, cc_ref = conv_lstm_cell_reference(x, h, c, params)
    # bf16 matmul operands (f32 accumulation) -> loosened tolerance vs f32 ref.
    assert jnp.allclose(ch_out, ch_ref, rtol=3e-2, atol=3e-2)
    assert jnp.allclose(cc_out, cc_ref, rtol=3e-2, atol=3e-2)

    print("KERNEL_OK")
</pallas_src>

<mosaic_0001>
module attributes {stable_mosaic.version = 11 : i64} {
  func.func @convlstm_kernel(%arg0: i32, %arg1: memref<1x18x18x128xbf16, #tpu.memory_space<vmem>>, %arg2: memref<1152x128xbf16, #tpu.memory_space<vmem>>, %arg3: memref<1x128xf32, #tpu.memory_space<vmem>>, %arg4: memref<96x256xf32, #tpu.memory_space<vmem>>, %arg5: memref<32x256xf32, #tpu.memory_space<vmem>>, %arg6: memref<64x256xf32, #tpu.memory_space<vmem>>, %arg7: memref<256x1152xbf16, #tpu.memory_space<vmem>>) attributes {dimension_semantics = [#tpu.dimension_semantics<parallel>], iteration_bounds = array<i64: 2>, scalar_prefetch = 0 : i64, scratch_operands = 1 : i64, tpu.core_type = #tpu.core_type<tc>, window_params = [{transform_indices = @transform_0, window_bounds = array<i64: 1, 18, 18, 128>}, {pipeline_mode = #tpu.pipeline_mode<synchronous>, transform_indices = @transform_1, window_bounds = array<i64: 1152, 128>}, {pipeline_mode = #tpu.pipeline_mode<synchronous>, transform_indices = @transform_2, window_bounds = array<i64: 1, 128>}, {pipeline_mode = #tpu.pipeline_mode<synchronous>, transform_indices = @transform_3, window_bounds = array<i64: 96, 256>}, {transform_indices = @transform_4, window_bounds = array<i64: 32, 256>}, {transform_indices = @transform_5, window_bounds = array<i64: 64, 256>}]} {
    %c0 = arith.constant 0 : index
    %c0_0 = arith.constant 0 : index
    %c0_1 = arith.constant 0 : index
    %c0_2 = arith.constant 0 : index
    %0 = vector.load %arg1[%c0, %c0_0, %c0_1, %c0_2] : memref<1x18x18x128xbf16, #tpu.memory_space<vmem>>, vector<1x18x18x128xbf16>
    %1 = vector.shape_cast %0 : vector<1x18x18x128xbf16> to vector<18x18x128xbf16>
    %2 = vector.extract_strided_slice %1 {offsets = [0, 0, 0], sizes = [16, 16, 128], strides = [1, 1, 1]} : vector<18x18x128xbf16> to vector<16x16x128xbf16>
    %3 = vector.shape_cast %2 : vector<16x16x128xbf16> to vector<256x128xbf16>
    %c0_3 = arith.constant 0 : index
    %c0_4 = arith.constant 0 : index
    %4 = vector.load %arg7[%c0_3, %c0_4] : memref<256x1152xbf16, #tpu.memory_space<vmem>>, vector<256x128xbf16>
    tpu.vector_store %arg7[%c0_3, %c0_4], %3 {strides = array<i32>} : memref<256x1152xbf16, #tpu.memory_space<vmem>>, vector<256x128xbf16>,
    %5 = vector.extract_strided_slice %1 {offsets = [0, 1, 0], sizes = [16, 16, 128], strides = [1, 1, 1]} : vector<18x18x128xbf16> to vector<16x16x128xbf16>
    %6 = vector.shape_cast %5 : vector<16x16x128xbf16> to vector<256x128xbf16>
    %c0_5 = arith.constant 0 : index
    %c128 = arith.constant 128 : index
    %7 = vector.load %arg7[%c0_5, %c128] : memref<256x1152xbf16, #tpu.memory_space<vmem>>, vector<256x128xbf16>
    tpu.vector_store %arg7[%c0_5, %c128], %6 {strides = array<i32>} : memref<256x1152xbf16, #tpu.memory_space<vmem>>, vector<256x128xbf16>,
    %8 = vector.extract_strided_slice %1 {offsets = [0, 2, 0], sizes = [16, 16, 128], strides = [1, 1, 1]} : vector<18x18x128xbf16> to vector<16x16x128xbf16>
    %9 = vector.shape_cast %8 : vector<16x16x128xbf16> to vector<256x128xbf16>
    %c0_6 = arith.constant 0 : index
    %c256 = arith.constant 256 : index
    %10 = vector.load %arg7[%c0_6, %c256] : memref<256x1152xbf16, #tpu.memory_space<vmem>>, vector<256x128xbf16>
    tpu.vector_store %arg7[%c0_6, %c256], %9 {strides = array<i32>} : memref<256x1152xbf16, #tpu.memory_space<vmem>>, vector<256x128xbf16>,
    %11 = vector.extract_strided_slice %1 {offsets = [1, 0, 0], sizes = [16, 16, 128], strides = [1, 1, 1]} : vector<18x18x128xbf16> to vector<16x16x128xbf16>
    %12 = vector.shape_cast %11 : vector<16x16x128xbf16> to vector<256x128xbf16>
    %c0_7 = arith.constant 0 : index
    %c384 = arith.constant 384 : index
    %13 = vector.load %arg7[%c0_7, %c384] : memref<256x1152xbf16, #tpu.memory_space<vmem>>, vector<256x128xbf16>
    tpu.vector_store %arg7[%c0_7, %c384], %12 {strides = array<i32>} : memref<256x1152xbf16, #tpu.memory_space<vmem>>, vector<256x128xbf16>,
    %14 = vector.extract_strided_slice %1 {offsets = [1, 1, 0], sizes = [16, 16, 128], strides = [1, 1, 1]} : vector<18x18x128xbf16> to vector<16x16x128xbf16>
    %15 = vector.shape_cast %14 : vector<16x16x128xbf16> to vector<256x128xbf16>
    %c0_8 = arith.constant 0 : index
    %c512 = arith.constant 512 : index
    %16 = vector.load %arg7[%c0_8, %c512] : memref<256x1152xbf16, #tpu.memory_space<vmem>>, vector<256x128xbf16>
    tpu.vector_store %arg7[%c0_8, %c512], %15 {strides = array<i32>} : memref<256x1152xbf16, #tpu.memory_space<vmem>>, vector<256x128xbf16>,
    %17 = vector.extract_strided_slice %1 {offsets = [1, 2, 0], sizes = [16, 16, 128], strides = [1, 1, 1]} : vector<18x18x128xbf16> to vector<16x16x128xbf16>
    %18 = vector.shape_cast %17 : vector<16x16x128xbf16> to vector<256x128xbf16>
    %c0_9 = arith.constant 0 : index
    %c640 = arith.constant 640 : index
    %19 = vector.load %arg7[%c0_9, %c640] : memref<256x1152xbf16, #tpu.memory_space<vmem>>, vector<256x128xbf16>
    tpu.vector_store %arg7[%c0_9, %c640], %18 {strides = array<i32>} : memref<256x1152xbf16, #tpu.memory_space<vmem>>, vector<256x128xbf16>,
    %20 = vector.extract_strided_slice %1 {offsets = [2, 0, 0], sizes = [16, 16, 128], strides = [1, 1, 1]} : vector<18x18x128xbf16> to vector<16x16x128xbf16>
    %21 = vector.shape_cast %20 : vector<16x16x128xbf16> to vector<256x128xbf16>
    %c0_10 = arith.constant 0 : index
    %c768 = arith.constant 768 : index
    %22 = vector.load %arg7[%c0_10, %c768] : memref<256x1152xbf16, #tpu.memory_space<vmem>>, vector<256x128xbf16>
    tpu.vector_store %arg7[%c0_10, %c768], %21 {strides = array<i32>} : memref<256x1152xbf16, #tpu.memory_space<vmem>>, vector<256x128xbf16>,
    %23 = vector.extract_strided_slice %1 {offsets = [2, 1, 0], sizes = [16, 16, 128], strides = [1, 1, 1]} : vector<18x18x128xbf16> to vector<16x16x128xbf16>
    %24 = vector.shape_cast %23 : vector<16x16x128xbf16> to vector<256x128xbf16>
    %c0_11 = arith.constant 0 : index
    %c896 = arith.constant 896 : index
    %25 = vector.load %arg7[%c0_11, %c896] : memref<256x1152xbf16, #tpu.memory_space<vmem>>, vector<256x128xbf16>
    tpu.vector_store %arg7[%c0_11, %c896], %24 {strides = array<i32>} : memref<256x1152xbf16, #tpu.memory_space<vmem>>, vector<256x128xbf16>,
    %26 = vector.extract_strided_slice %1 {offsets = [2, 2, 0], sizes = [16, 16, 128], strides = [1, 1, 1]} : vector<18x18x128xbf16> to vector<16x16x128xbf16>
    %27 = vector.shape_cast %26 : vector<16x16x128xbf16> to vector<256x128xbf16>
    %c0_12 = arith.constant 0 : index
    %c1024 = arith.constant 1024 : index
    %28 = vector.load %arg7[%c0_12, %c1024] : memref<256x1152xbf16, #tpu.memory_space<vmem>>, vector<256x128xbf16>
    tpu.vector_store %arg7[%c0_12, %c1024], %27 {strides = array<i32>} : memref<256x1152xbf16, #tpu.memory_space<vmem>>, vector<256x128xbf16>,
    %c0_13 = arith.constant 0 : index
    %c0_14 = arith.constant 0 : index
    %29 = vector.load %arg7[%c0_13, %c0_14] : memref<256x1152xbf16, #tpu.memory_space<vmem>>, vector<256x1152xbf16>
    %c0_15 = arith.constant 0 : index
    %c0_16 = arith.constant 0 : index
    %30 = vector.load %arg2[%c0_15, %c0_16] : memref<1152x128xbf16, #tpu.memory_space<vmem>>, vector<1152x128xbf16>
    %cst = arith.constant dense<0.000000e+00> : vector<256x128xf32>
    %31 = tpu.matmul %29, %30, %cst {dimension_numbers = #tpu.dot_dimension_numbers<[1], [0], [0], [1], [0, 0, 1, 1], [], []>} : vector<256x1152xbf16>, vector<1152x128xbf16>, vector<256x128xf32> -> vector<256x128xf32>
    %c0_17 = arith.constant 0 : index
    %c0_18 = arith.constant 0 : index
    %32 = vector.load %arg3[%c0_17, %c0_18] : memref<1x128xf32, #tpu.memory_space<vmem>>, vector<1x128xf32>
    %33 = vector.broadcast %32 : vector<1x128xf32> to vector<256x128xf32>
    %34 = arith.addf %31, %33 : vector<256x128xf32>
    %c0_19 = arith.constant 0 : index
    %c0_20 = arith.constant 0 : index
    %35 = vector.load %arg4[%c0_19, %c0_20] : memref<96x256xf32, #tpu.memory_space<vmem>>, vector<64x256xf32>
    %c64 = arith.constant 64 : index
    %c0_21 = arith.constant 0 : index
    %36 = vector.load %arg4[%c64, %c0_21] : memref<96x256xf32, #tpu.memory_space<vmem>>, vector<32x256xf32>
    %37 = tpu.transpose %34, [1, 0] : vector<256x128xf32> -> vector<128x256xf32>
    %c0_22 = arith.constant 0 : index
    %c0_23 = arith.constant 0 : index
    %38 = vector.load %arg5[%c0_22, %c0_23] : memref<32x256xf32, #tpu.memory_space<vmem>>, vector<32x256xf32>
    %39 = tpu.concatenate %38, %38 in 0 : vector<32x256xf32>, vector<32x256xf32> -> vector<64x256xf32>
    %40 = vector.extract_strided_slice %37 {offsets = [0, 0], sizes = [64, 256], strides = [1, 1]} : vector<128x256xf32> to vector<64x256xf32>
    %41 = arith.mulf %39, %35 : vector<64x256xf32>
    %42 = arith.addf %40, %41 : vector<64x256xf32>
    %43 = arith.negf %42 : vector<64x256xf32>
    %44 = math.exp %43 : vector<64x256xf32>
    %cst_24 = arith.constant 1.000000e+00 : f32
    %45 = vector.broadcast %cst_24 : f32 to vector<64x256xf32>
    %46 = arith.addf %45, %44 : vector<64x256xf32>
    %47 = arith.divf %45, %46 : vector<64x256xf32>
    %48 = vector.extract_strided_slice %47 {offsets = [0, 0], sizes = [32, 256], strides = [1, 1]} : vector<64x256xf32> to vector<32x256xf32>
    %49 = vector.extract_strided_slice %47 {offsets = [32, 0], sizes = [32, 256], strides = [1, 1]} : vector<64x256xf32> to vector<32x256xf32>
    %50 = arith.mulf %49, %38 : vector<32x256xf32>
    %51 = vector.extract_strided_slice %37 {offsets = [64, 0], sizes = [32, 256], strides = [1, 1]} : vector<128x256xf32> to vector<32x256xf32>
    %52 = math.tanh %51 : vector<32x256xf32>
    %53 = arith.mulf %48, %52 : vector<32x256xf32>
    %54 = arith.addf %50, %53 : vector<32x256xf32>
    %55 = vector.extract_strided_slice %37 {offsets = [96, 0], sizes = [32, 256], strides = [1, 1]} : vector<128x256xf32> to vector<32x256xf32>
    %56 = arith.mulf %54, %36 : vector<32x256xf32>
    %57 = arith.addf %55, %56 : vector<32x256xf32>
    %58 = arith.negf %57 : vector<32x256xf32>
    %59 = math.exp %58 : vector<32x256xf32>
    %cst_25 = arith.constant 1.000000e+00 : f32
    %60 = vector.broadcast %cst_25 : f32 to vector<32x256xf32>
    %61 = arith.addf %60, %59 : vector<32x256xf32>
    %62 = arith.divf %60, %61 : vector<32x256xf32>
    %63 = math.tanh %54 : vector<32x256xf32>
    %64 = arith.mulf %62, %63 : vector<32x256xf32>
    %65 = tpu.concatenate %64, %54 in 0 : vector<32x256xf32>, vector<32x256xf32> -> vector<64x256xf32>
    %c0_26 = arith.constant 0 : index
    %c0_27 = arith.constant 0 : index
    %66 = vector.load %arg6[%c0_26, %c0_27] : memref<64x256xf32, #tpu.memory_space<vmem>>, vector<64x256xf32>
    tpu.vector_store %arg6[%c0_26, %c0_27], %65 {strides = array<i32>} : memref<64x256xf32, #tpu.memory_space<vmem>>, vector<64x256xf32>,
    return
  }
  func.func @transform_0(%arg0: i32) -> (i32, i32, i32, i32) {
    %c0_i32 = arith.constant 0 : i32
    %c0_i32_0 = arith.constant 0 : i32
    %c0_i32_1 = arith.constant 0 : i32
    %c0_i32_2 = arith.constant 0 : i32
    return %arg0, %c0_i32, %c0_i32_0, %c0_i32_1 : i32, i32, i32, i32
  }
  func.func @transform_1(%arg0: i32) -> (i32, i32) {
    %c0_i32 = arith.constant 0 : i32
    %c0_i32_0 = arith.constant 0 : i32
    %c0_i32_1 = arith.constant 0 : i32
    return %c0_i32, %c0_i32_0 : i32, i32
  }
  func.func @transform_2(%arg0: i32) -> (i32, i32) {
    %c0_i32 = arith.constant 0 : i32
    %c0_i32_0 = arith.constant 0 : i32
    %c0_i32_1 = arith.constant 0 : i32
    return %c0_i32, %c0_i32_0 : i32, i32
  }
  func.func @transform_3(%arg0: i32) -> (i32, i32) {
    %c0_i32 = arith.constant 0 : i32
    %c0_i32_0 = arith.constant 0 : i32
    %c0_i32_1 = arith.constant 0 : i32
    return %c0_i32, %c0_i32_0 : i32, i32
  }
  func.func @transform_4(%arg0: i32) -> (i32, i32) {
    %c0_i32 = arith.constant 0 : i32
    %c0_i32_0 = arith.constant 0 : i32
    return %c0_i32, %arg0 : i32, i32
  }
  func.func @transform_5(%arg0: i32) -> (i32, i32) {
    %c0_i32 = arith.constant 0 : i32
    %c0_i32_0 = arith.constant 0 : i32
    return %c0_i32, %arg0 : i32, i32
  }
}

</mosaic_0001>

<bundles_post_ra>
// kernel: conv_lstm_cell_forward.1
= control target key start
LH: loop header
LB: loop body
LE: loop exit
PB: predicated region body
PF: predicated region fallthrough
CT: control target
= control target key end

     0   :  { %s4349_s18 = smov 0   ;;  %s4351_s19 = smov 0   ;;  %s5887_s0 = inlined_call_operand.vmem [shape: bf16[2,18,18,128], index: 0, kind: input, shape index: {}]   ;;  %s5888_s1 = inlined_call_operand.vmem [shape: bf16[1152,128], index: 1, kind: input, shape index: {}]   ;;  %s5889_s2 = inlined_call_operand.vmem [shape: f32[1,128], index: 2, kind: input, shape index: {}]   ;;  %s5890_s3 = inlined_call_operand.vmem [shape: f32[96,256], index: 3, kind: input, shape index: {}]   ;;  %s5891_s4 = inlined_call_operand.vmem [shape: f32[32,512], index: 4, kind: input, shape index: {}]   ;;  %s5892_s5 = inlined_call_operand.vmem [shape: f32[64,512], index: 5, kind: output, shape index: {}]  }
   0x1   :  { %s4353_s20 = smov 0  }
   0x2 LB: > { %s4365_s21 = sadd.s32 4294967295, %s4317_s20   ;;  %s4368_s22 = sadd.s32 1, %s4317_s20   ;;  %s4317_s20 = sphi %s4353_s20, %s5928_s20   ;;  %s4313_s19 = sphi %s4351_s19, %s5927_s19   ;;  %s4309_s18 = sphi %s4349_s18, %s5926_s18  }
   0x3   : > { %s108_s23 = ssub.s32 %s4317_s20, %s4368_s22  ;;  %s111_s24 = sadd.s32 1, %s4313_s19 }
   0x4   : > { %p109_p0 = scmp.eq.s32.totalorder %s108_s23, 0  ;;  %p118_p1 = scmp.ne.s32.totalorder %s4313_s19, %s4309_s18 }
   0x5   : > { %p119_p2 = scmp.eq.s32.totalorder %s4317_s20, 0  ;;  %p148_p3 = scmp.eq.s32.totalorder %s4365_s21, 1 }
   0x6   : > { %s4378_s25 = scalar_select %p109_p0, %s4313_s19, %s111_s24  }
   0x7   : > { %p120_p4 = por %p119_p2, %p118_p1  ;;  %p4380_p5 = por %p148_p3, %p118_p1 }
   0x8   : > { %p3320_p6 = scmp.ge.s32.totalorder %s4317_s20, 2 }
   0xa   : > { %179 = sbr.rel (%p3320_p6) target bundleno = 25 (0x19), region = 28 }
  0x11   : > { %190 = sbr.rel (!%p120_p4) target bundleno = 25 (0x19), region = 36  ;;  %s192_s27 = sand.u32 (%p120_p4), 1, %s4313_s19  }
  0x12   : > { %s3502_s28 = sshll.u32 (%p120_p4), %s4317_s20, 4  ;;  %s3321_s29 = sshll.u32 (%p120_p4), %s192_s27, 6 }
  0x13   : > { %s197_s7 = scalar_lea.vmem (%p120_p4), %s5891_s4, %s3502_s28  ;;  %s194_s8 = scalar_lea.vmem (%p120_p4), [#allocation3], %s3321_s29 }
  0x14   : > { %v210_v0 = vld [vmem:[%s197_s7] sm:$0xff] (%p120_p4)  ;;  %v212_v1 = vld [vmem:[%s197_s7 + $0x8] sm:$0xff] (%p120_p4) }
  0x15   : > { %v214_v2 = vld [vmem:[%s197_s7 + $0x20] sm:$0xff] (%p120_p4)  ;;  %211 = vst [vmem:[%s194_s8] sm:$0xff] (%p120_p4), %v210_v0  ;;  %213 = vst [vmem:[%s194_s8 + $0x8] sm:$0xff] (%p120_p4), %v212_v1  ;;  %v216_v3 = vld [vmem:[%s197_s7 + $0x28] sm:$0xff] (%p120_p4) }
  0x16   : > { %215 = vst [vmem:[%s194_s8 + $0x10] sm:$0xff] (%p120_p4), %v214_v2  ;;  %v218_v4 = vld [vmem:[%s197_s7 + $0x40] sm:$0xff] (%p120_p4)  ;;  %v220_v5 = vld [vmem:[%s197_s7 + $0x48] sm:$0xff] (%p120_p4)  ;;  %217 = vst [vmem:[%s194_s8 + $0x18] sm:$0xff] (%p120_p4), %v216_v3 }
  0x17   : > { %219 = vst [vmem:[%s194_s8 + $0x20] sm:$0xff] (%p120_p4), %v218_v4  ;;  %221 = vst [vmem:[%s194_s8 + $0x28] sm:$0xff] (%p120_p4), %v220_v5  ;;  %v222_v6 = vld [vmem:[%s197_s7 + $0x60] sm:$0xff] (%p120_p4)  ;;  %v224_v7 = vld [vmem:[%s197_s7 + $0x68] sm:$0xff] (%p120_p4) }
  0x18   : > { %223 = vst [vmem:[%s194_s8 + $0x30] sm:$0xff] %v222_v6  ;;  %225 = vst [vmem:[%s194_s8 + $0x38] sm:$0xff] %v224_v7 }
  0x19 PF: > { %p3324_p7 = scmp.ge.s32.totalorder %s4317_s20, 1  ;;  %p230_p8 = scmp.lt.s32.totalorder %s4317_s20, 3 }
  0x1b   : > { %p231_p9 = pnand %p3324_p7, %p230_p8 }
  0x1d   : > { %234 = sbr.rel (%p231_p9) target bundleno = 774 (0x306), region = 59 }
  0x24   : > { %v4065_v8 = vld [vmem:[%s5888_s1 + $0x40] sm:$0xff]   ;;  %p268_p10 = scmp.lt.s32.totalorder %s4365_s21, 1  ;;  %v4067_v10 = vld [vmem:[%s5888_s1 + $0x48] sm:$0xff]   ;;  %v4069_v12 = vld [vmem:[%s5888_s1 + $0x50] sm:$0xff]   ;;  %vm442_vm0 = vsmask.f32 3328 }
  0x25   : > { %v4066_v9 = vld [vmem:[%s5888_s1] sm:$0xff]   ;;  %3504 = vmatprep.subr.bf16.mxu0 %v4065_v8  ;;  %4024 = vmatprep.subr.bf16.mxu1 %v4065_v8  ;;  %v4068_v11 = vld [vmem:[%s5888_s1 + $0x8] sm:$0xff]   ;;  %v4070_v13 = vld [vmem:[%s5888_s1 + $0x10] sm:$0xff]   ;;  %vm443_vm1 = vsmask.f32 7440  ;;  %vm925_vm3 = vcmask 1042432  }
  0x26   : > { %3505 = vmatpush3.bf16.msra.mxu0 %v4066_v9  ;;  %4032 = vmatpush3.bf16.msra.mxu1 %v4066_v9  ;;  %s269_s23 = scalar_select %p268_p10, %s4365_s21, 1  ;;  %v4071_v14 = vld [vmem:[%s5888_s1 + $0x58] sm:$0xff]   ;;  %v4073_v16 = vld [vmem:[%s5888_s1 + $0x60] sm:$0xff]   ;;  %v4075_v18 = vld [vmem:[%s5888_s1 + $0x68] sm:$0xff]   ;;  %vm926_vm4 = vcmask 1046532  }
  0x27   : > { %3506 = vmatprep.subr.bf16.mxu0 %v4067_v10  ;;  %4025 = vmatprep.subr.bf16.mxu1 %v4067_v10  ;;  %v4072_v15 = vld [vmem:[%s5888_s1 + $0x18] sm:$0xff]   ;;  %v4074_v17 = vld [vmem:[%s5888_s1 + $0x20] sm:$0xff]   ;;  %v4076_v24 = vld [vmem:[%s5888_s1 + $0x28] sm:$0xff]  }
  0x28   : > { %s4040_s30 = smul.u32 216, %s269_s23  ;;  %v4077_v29 = vld [vmem:[%s5888_s1 + $0x70] sm:$0xff]   ;;  %v4079_v44 = vld [vmem:[%s5888_s1 + $0x78] sm:$0xff]   ;;  %vm4469_vm2 = vmor %vm442_vm0, %vm443_vm1 }
  0x29   : > { %v4078_v39 = vld [vmem:[%s5888_s1 + $0x30] sm:$0xff]   ;;  %v4080_v58 = vld [vmem:[%s5888_s1 + $0x38] sm:$0xff]   ;;  %v4083_v1 = vld [vmem:[%s5888_s1 + $0xc0] sm:$0xff]  }
  0x2a   : > { %3507 = vmatpush3.bf16.msra.mxu0 %v4068_v11  ;;  %4033 = vmatpush3.bf16.msra.mxu1 %v4068_v11  ;;  %s4424_s12 = scalar_lea.vmem %s5887_s0, %s4040_s30  ;;  %v4084_v4 = vld [vmem:[%s5888_s1 + $0x140] sm:$0xff]   ;;  %vm4665_vm5 = vmor %vm925_vm3, %vm926_vm4 }
  0x2b   : > { %3508 = vmatprep.subr.bf16.mxu0 %v4069_v12  ;;  %4026 = vmatprep.subr.bf16.mxu1 %v4069_v12  ;;  %v4433_v19 = vld [vmem:[%s4424_s12] sm:$0xf]  ;;  %v4436_v20 = vld [vmem:[%s4424_s12 + $0x4] sm:$0xf]  ;;  %v4439_v21 = vld [vmem:[%s4424_s12 + $0x8] sm:$0x1] }
  0x2c   : > { %v446_v22 = vshrl.u32 %v4433_v19, 16  ;;  %v449_v23 = vshll.u32 %v4433_v19, 16  ;;  %v455_v25 = vshll.u32 %v4436_v20, 16  ;;  %v459_v26 = vshrl.u32 %v4436_v20, 16  ;;  %v4450_v28 = vld [vmem:[%s4424_s12 + $0x90] sm:$0xf] }
  0x2d   : > { %v465_v27 = vshll.u32 %v4439_v21, 16  ;;  %v3360_v32 = vrot.slane %v4433_v19, 9  ;;  %v313_v33 = vld [vmem:[%s4424_s12 + $0x94] sm:$0xf]  ;;  %v930_v36 = vrot.slane %v4436_v20, 5  ;;  %v734_v38 = vshrl.u32 %v4450_v28, 16 }
  0x2e   : > { %3509 = vmatpush3.bf16.msra.mxu0 %v4070_v13  ;;  %4034 = vmatpush3.bf16.msra.mxu1 %v4070_v13  ;;  %v448_v30 = vrot.slane %v446_v22, 4  ;;  %v451_v31 = vrot.slane %v449_v23, 5  ;;  %v457_v34 = vrot.slane %v455_v25, 5  ;;  %v461_v35 = vrot.slane %v459_v26, 4  ;;  %v314_v37 = vld [vmem:[%s4424_s12 + $0x98] sm:$0x1] }
  0x2f   : > { %3510 = vmatprep.subr.bf16.mxu0 %v4071_v14  ;;  %4027 = vmatprep.subr.bf16.mxu1 %v4071_v14  ;;  %v467_v41 = vrot.slane %v465_v27, 5  ;;  %v737_v42 = vshll.u32 %v4450_v28, 16  ;;  %v743_v43 = vshll.u32 %v313_v33, 16  ;;  %v736_v47 = vrot.slane %v734_v38, 4  ;;  %v4494_v5 = vld [vmem:[%s4424_s12 + $0xc] sm:$0xf] }
  0x30   : > { %v452_v40 = vor.u32 %v451_v31, %v448_v30  ;;  %v462_v46 = vor.u32 %v461_v35, %v457_v34  ;;  %v747_v48 = vshrl.u32 %v313_v33, 16  ;;  %v753_v49 = vshll.u32 %v314_v37, 16  ;;  %v4497_v6 = vld [vmem:[%s4424_s12 + $0x10] sm:$0xf]  ;;  %v4085_v8 = vld [vmem:[%s5888_s1 + $0x80] sm:$0xff]  }
  0x31   : > { %v933_v51 = vrot.slane %v4439_v21, 5  ;;  %v739_v52 = vrot.slane %v737_v42, 5  ;;  %v745_v53 = vrot.slane %v743_v43, 5  ;;  %v4476_v55 = vrot.slane %v930_v36, 4  ;;  %v4086_v9 = vld [vmem:[%s5888_s1 + $0x100] sm:$0xff]   ;;  %v4091_v43 = vld [vmem:[%s5888_s1 + $0xd0] sm:$0xff]  }
  0x32   : > { %3511 = vmatpush3.bf16.msra.mxu0 %v4072_v15  ;;  %4035 = vmatpush3.bf16.msra.mxu1 %v4072_v15  ;;  %v453_v50 = vrot.slane %v452_v40, 4  ;;  %v463_v54 = vrot.slane %v462_v46, 4  ;;  %v749_v56 = vrot.slane %v747_v48, 4  ;;  %v755_v57 = vrot.slane %v753_v49, 5  ;;  %v4508_v10 = vld [vmem:[%s4424_s12 + $0x14] sm:$0x1] }
  0x33   : > { %3512 = vmatprep.subr.bf16.mxu0 %v4073_v16  ;;  %4028 = vmatprep.subr.bf16.mxu1 %v4073_v16  ;;  %v740_v60 = vor.u32 %v739_v52, %v736_v47  ;;  %v3328_v3 = vcombine.low %v4433_v19, %v4436_v20  ;;  %v470_v11 = vshrl.u32 %v4494_v5, 16  ;;  %v473_v12 = vshll.u32 %v4494_v5, 16  ;;  %v316_v22 = vld [vmem:[%s4424_s12 + $0xa0] sm:$0xf]  ;;  %v4094_v52 = vld [vmem:[%s5888_s1 + $0x148] sm:$0xff]  }
  0x34   : > { %v458_v59 = vsel %vm4469_vm2, %v453_v50, %v457_v34  ;;  %v468_v61 = vsel %vm4469_vm2, %v463_v54, %v467_v41  ;;  %v750_v62 = vor.u32 %v749_v56, %v745_v53  ;;  %v479_v13 = vshll.u32 %v4497_v6, 16  ;;  %v4088_v34 = vld [vmem:[%s5888_s1 + $0x88] sm:$0xff]   ;;  %v4116_v19 = vld [vmem:[%s5888_s1 + $0x160] sm:$0xff]  }
  0x35   : > { %v3344_v63 = vcombine.low %v458_v59, %v468_v61  ;;  %v741_v0 = vrot.slane %v740_v60, 4  ;;  %v4516_v15 = vcombine.low %v4450_v28, %v313_v33  ;;  %v483_v16 = vshrl.u32 %v4497_v6, 16  ;;  %v4092_v59 = vld [vmem:[%s5888_s1 + $0x90] sm:$0xff]  }
  0x36   : > { %3513 = vmatpush3.bf16.msra.mxu0 %v4074_v17  ;;  %4036 = vmatpush3.bf16.msra.mxu1 %v4074_v17  ;;  %v751_v2 = vrot.slane %v750_v62, 4  ;;  %v489_v17 = vshll.u32 %v4508_v10, 16  ;;  %v472_v25 = vrot.slane %v470_v11, 4  ;;  %v475_v26 = vrot.slane %v473_v12, 5  ;;  %v4096_v62 = vld [vmem:[%s5888_s1 + $0x108] sm:$0xff]  }
  0x37   : > { %3514 = vmatprep.subr.bf16.mxu0 %v4075_v18  ;;  %4029 = vmatprep.subr.bf16.mxu1 %v4075_v18  ;;  %v746_v7 = vsel %vm4469_vm2, %v741_v0, %v745_v53  ;;  %v315_v18 = vld [vmem:[%s4424_s12 + $0x9c] sm:$0xf]  ;;  %v481_v27 = vrot.slane %v479_v13, 5  ;;  %v485_v28 = vrot.slane %v483_v16, 4  ;;  %v767_v37 = vshll.u32 %v316_v22, 16 }
  0x38   : > { %2067 = vmatprep.mubr.bf16.mxu0 %v3344_v63  ;;  %v756_v14 = vsel %vm4469_vm2, %v751_v2, %v755_v57  ;;  %v491_v30 = vrot.slane %v489_v17, 5  ;;  %v758_v31 = vshrl.u32 %v315_v18, 16  ;;  %v761_v33 = vshll.u32 %v315_v18, 16  ;;  %v4556_v63 = vld [vmem:[%s4424_s12 + $0x18] sm:$0xf] }
  0x39   : > { %v4522_v23 = vcombine.low %v746_v7, %v756_v14  ;;  %v476_v35 = vor.u32 %v475_v26, %v472_v25  ;;  %v771_v38 = vshrl.u32 %v316_v22, 16  ;;  %v486_v40 = vor.u32 %v485_v28, %v481_v27  ;;  %v4559_v0 = vld [vmem:[%s4424_s12 + $0x1c] sm:$0xf]  ;;  %v318_v14 = vld [vmem:[%s4424_s12 + $0xa8] sm:$0xf] }
  0x3a   : > { %3515 = vmatpush3.bf16.msra.mxu0 %v4076_v24  ;;  %4037 = vmatpush3.bf16.msra.mxu1 %v4076_v24  ;;  %v4087_v24 = vld [vmem:[%s5888_s1 + $0xc8] sm:$0xff]   ;;  %v760_v41 = vrot.slane %v758_v31, 4  ;;  %v763_v42 = vrot.slane %v761_v33, 5  ;;  %v769_v46 = vrot.slane %v767_v37, 5  ;;  %v4093_v2 = vld [vmem:[%s5888_s1 + $0xd8] sm:$0xff]   ;;  %v497_v7 = vshll.u32 %v4556_v63, 16 }
  0x3b   : > { %3516 = vmatprep.subr.bf16.mxu0 %v4077_v29  ;;  %4030 = vmatprep.subr.bf16.mxu1 %v4077_v29  ;;  %5908 = vst [vmem:[#allocation5_spill] sm:$0xff] %v4522_v23  ;;  %v317_v29 = vld [vmem:[%s4424_s12 + $0xa4] sm:$0x1]  ;;  %v773_v47 = vrot.slane %v771_v38, 4  ;;  %v487_v49 = vrot.slane %v486_v40, 4  ;;  %v4575_v11 = vcombine.low %v315_v18, %v316_v22  ;;  %v507_v12 = vshrl.u32 %v4559_v0, 16 }
  0x3c   : > { %2163 = vmatprep.mubr.bf16.mxu1 %v4522_v23  ;;  %v764_v50 = vor.u32 %v763_v42, %v760_v41  ;;  %v319_v16 = vld [vmem:[%s4424_s12 + $0xac] sm:$0xf]  ;;  %v499_v26 = vrot.slane %v497_v7, 5  ;;  %v320_v18 = vld [vmem:[%s4424_s12 + $0xb0] sm:$0x1]  ;;  %v782_v28 = vshrl.u32 %v318_v14, 16 }
  0x3d   : > { %v774_v54 = vor.u32 %v773_v47, %v769_v46  ;;  %v492_v56 = vsel %vm4469_vm2, %v487_v49, %v491_v30  ;;  %v509_v22 = vrot.slane %v507_v12, 4  ;;  %v785_v30 = vshll.u32 %v318_v14, 16  ;;  %v4099_v37 = vld [vmem:[%s5888_s1 + $0xe0] sm:$0xff]  }
  0x3e   : > { %3517 = vmatpush3.bf16.msra.mxu0 %v4078_v39  ;;  %4038 = vmatpush3.bf16.msra.mxu1 %v4078_v39  ;;  %v777_v39 = vshll.u32 %v317_v29, 16  ;;  %v765_v57 = vrot.slane %v764_v50, 4  ;;  %v791_v33 = vshll.u32 %v319_v16, 16  ;;  %v4100_v41 = vld [vmem:[%s5888_s1 + $0xa0] sm:$0xff]   ;;  %v937_v21 = vrot.slane %v4497_v6, 5 }
  0x3f   : > { %3518 = vmatprep.subr.bf16.mxu0 %v4079_v44  ;;  %4031 = vmatprep.subr.bf16.mxu1 %v4079_v44  ;;  %v477_v44 = vrot.slane %v476_v35, 4  ;;  %v775_v61 = vrot.slane %v774_v54, 4  ;;  %v801_v35 = vshll.u32 %v320_v18, 16  ;;  %v787_v40 = vrot.slane %v785_v30, 5  ;;  %v4105_v18 = vld [vmem:[%s5888_s1 + $0xf0] sm:$0xff]  }
  0x40   : > { %v779_v48 = vrot.slane %v777_v39, 5  ;;  %v784_v39 = vrot.slane %v782_v28, 4  ;;  %v4605_v54 = vcombine.low %v318_v14, %v319_v16  ;;  %v4106_v14 = vld [vmem:[%s5888_s1 + $0x150] sm:$0xff]   ;;  %v323_v30 = vld [vmem:[%s4424_s12 + $0xbc] sm:$0x1] }
  0x41   : > { %v482_v53 = vsel %vm4469_vm2, %v477_v44, %v481_v27  ;;  %v803_v49 = vrot.slane %v801_v35, 5 }
  0x42   : > { %3519 = vmatpush3.bf16.msra.mxu0 %v4080_v58  ;;  %4039 = vmatpush3.bf16.msra.mxu1 %v4080_v58  ;;  %v4545_v58 = vcombine.low %v4494_v5, %v4497_v6  ;;  %v4550_v60 = vcombine.low %v482_v53, %v492_v56  ;;  %v4603_v53 = vcombine.low %v4556_v63, %v4559_v0  ;;  %v4608_v56 = vld [vmem:[%s4424_s12 + $0x24] sm:$0xf] }
  0x43   : > { %3616 = vmatprep.subr.bf16.mxu1 %v4083_v1  ;;  %3728 = vmatprep.subr.bf16.mxu0 %v4084_v4  ;;  %v770_v1 = vsel %vm4469_vm2, %v765_v57, %v769_v46  ;;  %v494_v4 = vshrl.u32 %v4556_v63, 16  ;;  %v4101_v46 = vld [vmem:[%s5888_s1 + $0xe8] sm:$0xff]  }
  0x44   : > { %5910 = vst [vmem:[#allocation7_spill] sm:$0xff] %v4603_v53  ;;  %v4611_v57 = vld [vmem:[%s4424_s12 + $0x28] sm:$0xf] }
  0x45   : > { %2068 = vmatmul.mubr.bf16.vlgmr.msra.gmra.mrb[0].mxu0 %v3328_v3  ;;  %2164 = vmatmul.mubr.bf16.vlgmr.msra.gmra.mrb[0].mxu1 %v4516_v15  ;;  %v4567_v3 = vld [vmem:[%s4424_s12 + $0x20] sm:$0x1]  ;;  %v496_v25 = vrot.slane %v494_v4, 4  ;;  %v521_v4 = vshll.u32 %v4608_v56, 16  ;;  %v531_v12 = vshrl.u32 %v4611_v57, 16 }
  0x46   : > { %3617 = vmatpush3.bf16.msra.mxu1 %v4085_v8  ;;  %3729 = vmatpush3.bf16.msra.mxu0 %v4086_v9  ;;  %v503_v8 = vshll.u32 %v4559_v0, 16  ;;  %v780_v9 = vsel %vm4469_vm2, %v775_v61, %v779_v48  ;;  %v513_v13 = vshll.u32 %v4567_v3, 16  ;;  %v788_v48 = vor.u32 %v787_v40, %v784_v39 }
  0x47   : > { %3618 = vmatprep.subr.bf16.mxu1 %v4087_v24  ;;  %3730 = vmatprep.subr.bf16.mxu0 %v4094_v52  ;;  %v4581_v17 = vcombine.low %v770_v1, %v780_v9  ;;  %v4095_v24 = vld [vmem:[%s5888_s1 + $0x98] sm:$0xff]   ;;  %v500_v31 = vor.u32 %v499_v26, %v496_v25  ;;  %v4619_v1 = vld [vmem:[%s4424_s12 + $0x2c] sm:$0x1]  ;;  %v527_v9 = vshll.u32 %v4611_v57, 16  ;;  %v523_v25 = vrot.slane %v521_v4, 5 }
  0x48   : > { %2075 = vmatprep.mubr.bf16.mxu0 %v4550_v60  ;;  %v505_v27 = vrot.slane %v503_v8, 5  ;;  %v515_v29 = vrot.slane %v513_v13, 5  ;;  %v789_v61 = vrot.slane %v788_v48, 4  ;;  %v4628_v13 = vld [vmem:[%s4424_s12 + $0xb4] sm:$0xf]  ;;  %v537_v26 = vshll.u32 %v4619_v1, 16 }
  0x49   : > { %5909 = vst [vmem:[#allocation6_spill] sm:$0xff] %v4581_v17  ;;  %2171 = vmatprep.mubr.bf16.mxu1 %v4581_v17  ;;  %v501_v42 = vrot.slane %v500_v31, 4  ;;  %v533_v28 = vrot.slane %v531_v12, 4  ;;  %v806_v31 = vshrl.u32 %v4628_v13, 16  ;;  %v4109_v48 = vld [vmem:[%s5888_s1 + $0xf8] sm:$0xff]  }
  0x4a   : > { %3619 = vmatpush3.bf16.msra.mxu1 %v4088_v34  ;;  %3731 = vmatpush3.bf16.msra.mxu0 %v4096_v62  ;;  %v795_v34 = vshrl.u32 %v319_v16, 16  ;;  %v510_v38 = vor.u32 %v509_v22, %v505_v27  ;;  %v4102_v62 = vld [vmem:[%s5888_s1 + $0xa8] sm:$0xff]  }
  0x4b   : > { %3620 = vmatprep.subr.bf16.mxu1 %v4091_v43  ;;  %v793_v43 = vrot.slane %v791_v33, 5  ;;  %v506_v50 = vsel %vm4469_vm2, %v501_v42, %v505_v27  ;;  %v4637_v27 = vld [vmem:[%s4424_s12 + $0xb8] sm:$0xf]  ;;  %v4108_v33 = vld [vmem:[%s5888_s1 + $0x110] sm:$0xff]   ;;  %3732 = vmatprep.subr.bf16.mxu0 %v4106_v14  ;;  %v808_v40 = vrot.slane %v806_v31, 4 }
  0x4c   : > { %v797_v44 = vrot.slane %v795_v34, 4  ;;  %v511_v47 = vrot.slane %v510_v38, 4  ;;  %v809_v38 = vshll.u32 %v4628_v13, 16  ;;  %v819_v42 = vshrl.u32 %v4637_v27, 16  ;;  %v4981_v17 = vld [vmem:[%s4424_s12 + $0x88] sm:$0xf] }
  0x4d   : > { %2076 = vmatmul.mubr.bf16.gmra.mrb[4].mxu0 %v4545_v58  ;;  %2172 = vmatmul.mubr.bf16.gmra.mrb[4].mxu1 %v4575_v11  ;;  %v794_v16 = vsel %vm4469_vm2, %v789_v61, %v793_v43  ;;  %v4112_v61 = vld [vmem:[%s5888_s1 + $0x158] sm:$0xff]  }
  0x4e   : > { %3621 = vmatpush3.bf16.msra.mxu1 %v4092_v59  ;;  %v798_v52 = vor.u32 %v797_v44, %v793_v43  ;;  %v516_v59 = vsel %vm4469_vm2, %v511_v47, %v515_v29  ;;  %v529_v29 = vrot.slane %v527_v9, 5  ;;  %v4107_v43 = vld [vmem:[%s5888_s1 + $0xb0] sm:$0xff]   ;;  %3733 = vmatpush3.bf16.msra.mxu0 %v4108_v33  ;;  %v825_v47 = vshll.u32 %v323_v30, 16  ;;  %v4113_v9 = vld [vmem:[%s5888_s1 + $0x118] sm:$0xff]  }
  0x4f   : > { %3622 = vmatprep.subr.bf16.mxu1 %v4093_v2  ;;  %v518_v2 = vshrl.u32 %v4608_v56, 16  ;;  %v4623_v7 = vcombine.low %v506_v50, %v516_v59  ;;  %v821_v59 = vrot.slane %v819_v42, 4  ;;  %3734 = vmatprep.subr.bf16.mxu0 %v4112_v61  ;;  %v4709_v30 = vsel %vm4665_vm5, %v3360_v32, %v930_v36  ;;  %v4117_v42 = vld [vmem:[%s5888_s1 + $0x120] sm:$0xff]  }
  0x50   : > { %v799_v8 = vrot.slane %v798_v52, 4  ;;  %v534_v39 = vor.u32 %v533_v28, %v529_v29  ;;  %v827_v4 = vrot.slane %v825_v47, 5  ;;  %v4701_v28 = vld [vmem:[%s4424_s12 + $0x34] sm:$0xf]  ;;  %v4729_v36 = vcombine.low %v4628_v13, %v4637_v27  ;;  %v4745_v47 = vld [vmem:[%s4424_s12 + $0x40] sm:$0xf] }
  0x51   : > { %2083 = vmatprep.mubr.bf16.mxu0 %v4623_v7  ;;  %v551_v20 = vshll.u32 %v4701_v28, 16  ;;  %v575_v61 = vshll.u32 %v4745_v47, 16 }
  0x52   : > { %3623 = vmatpush3.bf16.msra.mxu1 %v4095_v24  ;;  %v520_v24 = vrot.slane %v518_v2, 4  ;;  %v804_v22 = vsel %vm4469_vm2, %v799_v8, %v803_v49  ;;  %v535_v50 = vrot.slane %v534_v39, 4  ;;  %v4110_v8 = vld [vmem:[%s5888_s1 + $0xb8] sm:$0xff]   ;;  %3735 = vmatpush3.bf16.msra.mxu0 %v4113_v9 }
  0x53   : > { %3624 = vmatprep.subr.bf16.mxu1 %v4099_v37  ;;  %v4650_v34 = vcombine.low %v794_v16, %v804_v22  ;;  %v539_v37 = vrot.slane %v537_v26, 5  ;;  %v4685_v16 = vcombine.low %v4608_v56, %v4611_v57  ;;  %v3361_v26 = vrot.slane %v4494_v5, 9  ;;  %3736 = vmatprep.subr.bf16.mxu0 %v4116_v19 }
  0x54   : > { %v524_v35 = vor.u32 %v523_v25, %v520_v24 }
  0x55   : > { %5911 = vst [vmem:[#allocation8_spill] sm:$0xff] %v4650_v34  ;;  %2084 = vmatmul.mubr.bf16.gmra.mrb[8].mxu0 %v4603_v53  ;;  %2179 = vmatprep.mubr.bf16.mxu1 %v4650_v34  ;;  %v540_v12 = vsel %vm4469_vm2, %v535_v50, %v539_v37  ;;  %5914 = vst [vmem:[#allocation9_spill] sm:$0xff] %v4685_v16  ;;  %v4952_v34 = vld [vmem:[%s4424_s12 + $0x7c] sm:$0xf] }
  0x56   : > { %3625 = vmatpush3.bf16.msra.mxu1 %v4100_v41  ;;  %v815_v41 = vshll.u32 %v4637_v27, 16  ;;  %v525_v44 = vrot.slane %v524_v35, 4  ;;  %v555_v35 = vshrl.u32 %v4701_v28, 16  ;;  %v4739_v27 = vld [vmem:[%s4424_s12 + $0x3c] sm:$0xf]  ;;  %3737 = vmatpush3.bf16.msra.mxu0 %v4117_v42 }
  0x57   : > { %3626 = vmatprep.subr.bf16.mxu1 %v4101_v46  ;;  %v811_v46 = vrot.slane %v809_v38, 5  ;;  %2180 = vmatmul.mubr.bf16.gmra.mrb[8].mxu1 %v4605_v54  ;;  %v566_v50 = vshrl.u32 %v4739_v27, 16 }
  0x58   : > { %v817_v52 = vrot.slane %v815_v41, 5  ;;  %v553_v41 = vrot.slane %v551_v20, 5  ;;  %v4774_v20 = vld [vmem:[%s4424_s12 + $0x50] sm:$0x1] }
  0x59   : > { %v812_v2 = vor.u32 %v811_v46, %v808_v40 }
  0x5a   : > { %3627 = vmatpush3.bf16.msra.mxu1 %v4102_v62  ;;  %v530_v62 = vsel %vm4469_vm2, %v525_v44, %v529_v29  ;;  %v822_v14 = vor.u32 %v821_v59, %v817_v52  ;;  %v4698_v29 = vld [vmem:[%s4424_s12 + $0x30] sm:$0xf] }
  0x5b   : > { %3628 = vmatprep.subr.bf16.mxu1 %v4105_v18  ;;  %v4687_v24 = vcombine.low %v530_v62, %v540_v12  ;;  %v813_v25 = vrot.slane %v812_v2, 4  ;;  %v4695_v18 = vsel %vm4665_vm5, %v4476_v55, %v933_v51  ;;  %v4716_v55 = vld [vmem:[%s4424_s12 + $0x38] sm:$0x1]  ;;  %v542_v31 = vshrl.u32 %v4698_v29, 16 }
  0x5c   : > { %v823_v22 = vrot.slane %v822_v14, 4  ;;  %v545_v33 = vshll.u32 %v4698_v29, 16  ;;  %v561_v37 = vshll.u32 %v4716_v55, 16  ;;  %v3376_v46 = vcombine.low %v4709_v30, %v4695_v18  ;;  %v4768_v18 = vld [vmem:[%s4424_s12 + $0x4c] sm:$0xf] }
  0x5d   : > { %2091 = vmatprep.mubr.bf16.mxu0 %v4687_v24  ;;  %v818_v51 = vsel %vm4469_vm2, %v813_v25, %v817_v52  ;;  %v544_v39 = vrot.slane %v542_v31, 4  ;;  %v569_v52 = vshll.u32 %v4739_v27, 16  ;;  %v579_v62 = vshrl.u32 %v4745_v47, 16 }
  0x5e   : > { %3629 = vmatpush3.bf16.msra.mxu1 %v4107_v43  ;;  %v828_v32 = vsel %vm4469_vm2, %v823_v22, %v827_v4  ;;  %2092 = vmatmul.mubr.bf16.gmra.mrb[12].mxu0 %v4685_v16  ;;  %v547_v40 = vrot.slane %v545_v33, 5  ;;  %v557_v43 = vrot.slane %v555_v35, 4  ;;  %v563_v13 = vrot.slane %v561_v37, 5  ;;  %v4757_v4 = vld [vmem:[%s4424_s12 + $0x48] sm:$0xf]  ;;  %v4120_v22 = vld [vmem:[%s5888_s1 + $0x1c0] sm:$0xff]  }
  0x5f   : > { %3630 = vmatprep.subr.bf16.mxu1 %v4109_v48  ;;  %v4733_v38 = vcombine.low %v818_v51, %v828_v32  ;;  %v4748_v48 = vld [vmem:[%s4424_s12 + $0x44] sm:$0x1]  ;;  %v4765_v12 = vcombine.low %v4698_v29, %v4701_v28  ;;  %v568_v14 = vrot.slane %v566_v50, 4  ;;  %v571_v25 = vrot.slane %v569_v52, 5  ;;  %v4789_v50 = vld [vmem:[%s4424_s12 + $0x54] sm:$0xf] }
  0x60   : > { %v548_v44 = vor.u32 %v547_v40, %v544_v39  ;;  %v558_v59 = vor.u32 %v557_v43, %v553_v41  ;;  %v585_v2 = vshll.u32 %v4748_v48, 16  ;;  %v577_v51 = vrot.slane %v575_v61, 5  ;;  %v4798_v61 = vld [vmem:[%s4424_s12 + $0x58] sm:$0xf] }
  0x61   : > { %5915 = vst [vmem:[#allocation10_spill] sm:$0xff] %v4733_v38  ;;  %2187 = vmatprep.mubr.bf16.mxu1 %v4733_v38  ;;  %5916 = vst [vmem:[#allocation11_spill] sm:$0xff] %v4765_v12  ;;  %v581_v31 = vrot.slane %v579_v62, 4  ;;  %v572_v19 = vor.u32 %v571_v25, %v568_v14  ;;  %v939_v32 = vrot.slane %v937_v21, 4  ;;  %v940_v35 = vrot.slane %v4508_v10, 5  ;;  %v4121_v62 = vld [vmem:[%s5888_s1 + $0x128] sm:$0xff]  }
  0x62   : > { %3631 = vmatpush3.bf16.msra.mxu1 %v4110_v8  ;;  %v4119_v8 = vld [vmem:[%s5888_s1 + $0x168] sm:$0xff]   ;;  %v549_v9 = vrot.slane %v548_v44, 4  ;;  %v559_v30 = vrot.slane %v558_v59, 4  ;;  %v587_v33 = vrot.slane %v585_v2, 5  ;;  %v590_v40 = vshrl.u32 %v4757_v4, 16 }
  0x63   : > { %2188 = vmatmul.mubr.bf16.gmra.mrb[12].mxu1 %v4729_v36  ;;  %3738 = vmatprep.subr.bf16.mxu0 %v4119_v8  ;;  %v582_v39 = vor.u32 %v581_v31, %v577_v51  ;;  %v593_v42 = vshll.u32 %v4757_v4, 16  ;;  %v573_v44 = vrot.slane %v572_v19, 4  ;;  %v938_v10 = vsel %vm4665_vm5, %v3361_v26, %v937_v21  ;;  %v4122_v26 = vld [vmem:[%s5888_s1 + $0x180] sm:$0xff]  }
  0x64   : > { %2228 = vmatprep.mubr.bf16.mxu1 %v4545_v58  ;;  %v554_v58 = vsel %vm4469_vm2, %v549_v9, %v553_v41  ;;  %3840 = vmatprep.subr.bf16.mxu1 %v4120_v22  ;;  %v564_v37 = vsel %vm4469_vm2, %v559_v30, %v563_v13  ;;  %v599_v41 = vshll.u32 %v4768_v18, 16  ;;  %v592_v13 = vrot.slane %v590_v40, 4  ;;  %v4818_v22 = vld [vmem:[%s4424_s12 + $0x5c] sm:$0x1]  ;;  %v4125_v30 = vld [vmem:[%s5888_s1 + $0x170] sm:$0xff]  }
  0x65   : > { %v4785_v43 = vcombine.low %v554_v58, %v564_v37  ;;  %v583_v52 = vrot.slane %v582_v39, 4  ;;  %v595_v59 = vrot.slane %v593_v42, 5  ;;  %v578_v2 = vsel %vm4469_vm2, %v573_v44, %v577_v51  ;;  %3739 = vmatpush3.bf16.msra.mxu0 %v4121_v62  ;;  %v4126_v58 = vld [vmem:[%s5888_s1 + $0x130] sm:$0xff]  }
  0x66   : > { %v601_v6 = vrot.slane %v599_v41, 5  ;;  %v603_v5 = vshrl.u32 %v4768_v18, 16  ;;  %v609_v8 = vshll.u32 %v4774_v20, 16  ;;  %v941_v9 = vsel %vm4665_vm5, %v939_v32, %v940_v35  ;;  %3740 = vmatprep.subr.bf16.mxu0 %v4125_v30 }
  0x67   : > { %2099 = vmatprep.mubr.bf16.mxu0 %v4785_v43  ;;  %v588_v21 = vsel %vm4469_vm2, %v583_v52, %v587_v33  ;;  %v596_v14 = vor.u32 %v595_v59, %v592_v13  ;;  %v3362_v25 = vrot.slane %v4556_v63, 9  ;;  %v944_v33 = vrot.slane %v4559_v0, 5  ;;  %v4127_v52 = vld [vmem:[%s5888_s1 + $0x1c8] sm:$0xff]  }
  0x68   : > { %2100 = vmatmul.mubr.bf16.gmra.mrb[16].mxu0 %v4765_v12  ;;  %v4823_v51 = vcombine.low %v578_v2, %v588_v21  ;;  %v611_v31 = vrot.slane %v609_v8, 5  ;;  %v947_v19 = vrot.slane %v4567_v3, 5  ;;  %v614_v32 = vshrl.u32 %v4789_v50, 16  ;;  %v4854_v21 = vld [vmem:[%s4424_s12 + $0x60] sm:$0xf] }
  0x69   : > { %v597_v63 = vrot.slane %v596_v14, 4  ;;  %v617_v35 = vshll.u32 %v4789_v50, 16  ;;  %v4836_v37 = vcombine.low %v4739_v27, %v4745_v47  ;;  %v946_v39 = vrot.slane %v944_v33, 4  ;;  %3741 = vmatpush3.bf16.msra.mxu0 %v4126_v58  ;;  %v4864_v58 = vld [vmem:[%s4424_s12 + $0x64] sm:$0xf] }
  0x6a   : > { %2107 = vmatprep.mubr.bf16.mxu0 %v4823_v51  ;;  %v623_v40 = vshll.u32 %v4798_v61, 16  ;;  %v4839_v42 = vcombine.low %v938_v10, %v941_v9  ;;  %v616_v3 = vrot.slane %v614_v32, 4  ;;  %v627_v41 = vshrl.u32 %v4798_v61, 16  ;;  %v4128_v10 = vld [vmem:[%s5888_s1 + $0x188] sm:$0xff]  }
  0x6b   : > { %2229 = vmatmul.mubr.bf16.vlgmr.msra.gmra.mrb[16].mxu1 %v3376_v46  ;;  %v605_v46 = vrot.slane %v603_v5, 4  ;;  %5917 = vst [vmem:[#allocation12_spill] sm:$0xff] %v4836_v37  ;;  %v619_v44 = vrot.slane %v617_v35, 5  ;;  %v602_v13 = vsel %vm4469_vm2, %v597_v63, %v601_v6  ;;  %v633_v2 = vshll.u32 %v4818_v22, 16 }
  0x6c   : > { %2236 = vmatprep.mubr.bf16.mxu1 %v4603_v53  ;;  %3841 = vmatpush3.bf16.msra.mxu1 %v4122_v26  ;;  %v625_v62 = vrot.slane %v623_v40, 5  ;;  %v945_v5 = vsel %vm4665_vm5, %v3362_v25, %v944_v33  ;;  %v629_v26 = vrot.slane %v627_v41, 4  ;;  %v3363_v30 = vrot.slane %v4608_v56, 9  ;;  %v4131_v25 = vld [vmem:[%s5888_s1 + $0x138] sm:$0xff]  }
  0x6d   : > { %v606_v0 = vor.u32 %v605_v46, %v601_v6  ;;  %v620_v8 = vor.u32 %v619_v44, %v616_v3  ;;  %3842 = vmatprep.subr.bf16.mxu1 %v4127_v52  ;;  %v4130_v6 = vld [vmem:[%s5888_s1 + $0x178] sm:$0xff]   ;;  %v635_v14 = vrot.slane %v633_v2, 5  ;;  %v951_v46 = vrot.slane %v4611_v57, 5  ;;  %v4875_v57 = vld [vmem:[%s4424_s12 + $0x68] sm:$0x1]  ;;  %v4133_v3 = vld [vmem:[%s5888_s1 + $0x1d0] sm:$0xff]  }
  0x6e   : > { %v954_v56 = vrot.slane %v4619_v1, 5  ;;  %v948_v32 = vsel %vm4665_vm5, %v946_v39, %v947_v19  ;;  %v641_v40 = vshll.u32 %v4854_v21, 16  ;;  %3742 = vmatprep.subr.bf16.mxu0 %v4130_v6  ;;  %v647_v41 = vshll.u32 %v4864_v58, 16  ;;  %v4891_v39 = vld [vmem:[%s4424_s12 + $0x6c] sm:$0xf]  ;;  %v4149_v53 = vld [vmem:[%s5888_s1 + $0x1b8] sm:$0xff]  }
  0x6f   : > { %v607_v59 = vrot.slane %v606_v0, 4  ;;  %v621_v63 = vrot.slane %v620_v8, 4  ;;  %v953_v35 = vrot.slane %v951_v46, 4  ;;  %v638_v0 = vshrl.u32 %v4854_v21, 16  ;;  %v4894_v52 = vld [vmem:[%s4424_s12 + $0x70] sm:$0xf]  ;;  %3743 = vmatpush3.bf16.msra.mxu0 %v4131_v25 }
  0x70   : > { %3843 = vmatpush3.bf16.msra.mxu1 %v4128_v10  ;;  %2108 = vmatmul.mubr.bf16.gmra.mrb[20].mxu0 %v4836_v37  ;;  %v651_v19 = vshrl.u32 %v4864_v58, 16  ;;  %v657_v10 = vshll.u32 %v4875_v57, 16  ;;  %v4907_v8 = vld [vmem:[%s5888_s1 + $0x200] sm:$0xff]  }
  0x71   : > { %v612_v9 = vsel %vm4469_vm2, %v607_v59, %v611_v31  ;;  %v630_v31 = vor.u32 %v629_v26, %v625_v62  ;;  %v626_v1 = vsel %vm4469_vm2, %v621_v63, %v625_v62  ;;  %v4901_v59 = vcombine.low %v4757_v4, %v4768_v18  ;;  %3844 = vmatprep.subr.bf16.mxu1 %v4133_v3 }
  0x72   : > { %v4871_v33 = vcombine.low %v602_v13, %v612_v9  ;;  %v4134_v13 = vld [vmem:[%s5888_s1 + $0x190] sm:$0xff]   ;;  %v640_v2 = vrot.slane %v638_v0, 4  ;;  %v643_v62 = vrot.slane %v641_v40, 5  ;;  %v4909_v26 = vcombine.low %v945_v5, %v948_v32  ;;  %3976 = vmatprep.subr.bf16.mxu0 %v4907_v8  ;;  %v4136_v5 = vld [vmem:[%s5888_s1 + $0x1d8] sm:$0xff]  }
  0x73   : > { %2237 = vmatmul.mubr.bf16.gmra.mrb[20].mxu1 %v4839_v42  ;;  %v631_v44 = vrot.slane %v630_v31, 4  ;;  %v649_v9 = vrot.slane %v647_v41, 5  ;;  %v653_v25 = vrot.slane %v651_v19, 4  ;;  %v952_v31 = vsel %vm4665_vm5, %v3363_v30, %v951_v46  ;;  %v4137_v30 = vld [vmem:[%s5888_s1 + $0x198] sm:$0xff]  }
  0x74   : > { %2244 = vmatprep.mubr.bf16.mxu1 %v4685_v16  ;;  %2115 = vmatprep.mubr.bf16.mxu0 %v4871_v33  ;;  %v955_v0 = vsel %vm4665_vm5, %v953_v35, %v954_v56  ;;  %v644_v40 = vor.u32 %v643_v62, %v640_v2  ;;  %v659_v32 = vrot.slane %v657_v10, 5  ;;  %v3364_v3 = vrot.slane %v4698_v29, 9 }
  0x75   : > { %v636_v6 = vsel %vm4469_vm2, %v631_v44, %v635_v14  ;;  %3845 = vmatpush3.bf16.msra.mxu1 %v4134_v13  ;;  %v654_v14 = vor.u32 %v653_v25, %v649_v9  ;;  %v4929_v44 = vld [vmem:[%s4424_s12 + $0x74] sm:$0x1]  ;;  %v662_v56 = vshrl.u32 %v4891_v39, 16  ;;  %v665_v35 = vshll.u32 %v4891_v39, 16  ;;  %v4943_v25 = vld [vmem:[%s4424_s12 + $0x78] sm:$0xf] }
  0x76   : > { %v4913_v63 = vcombine.low %v626_v1, %v636_v6  ;;  %v958_v1 = vrot.slane %v4701_v28, 5  ;;  %v645_v46 = vrot.slane %v644_v40, 4  ;;  %v671_v41 = vshll.u32 %v4894_v52, 16  ;;  %3846 = vmatprep.subr.bf16.mxu1 %v4136_v5  ;;  %v4139_v40 = vld [vmem:[%s5888_s1 + $0x1e0] sm:$0xff]  }
  0x77   : > { %v655_v29 = vrot.slane %v654_v14, 4  ;;  %v961_v19 = vrot.slane %v4716_v55, 5  ;;  %v675_v13 = vshrl.u32 %v4894_v52, 16  ;;  %v664_v62 = vrot.slane %v662_v56, 4 }
  0x78   : > { %2116 = vmatmul.mubr.bf16.gmra.mrb[24].mxu0 %v4901_v59  ;;  %v960_v28 = vrot.slane %v958_v1, 4  ;;  %v650_v2 = vsel %vm4469_vm2, %v645_v46, %v649_v9  ;;  %v667_v10 = vrot.slane %v665_v35, 5  ;;  %v673_v6 = vrot.slane %v671_v41, 5 }
  0x79   : > { %2123 = vmatprep.mubr.bf16.mxu0 %v4913_v63  ;;  %v660_v55 = vsel %vm4469_vm2, %v655_v29, %v659_v32  ;;  %v677_v5 = vrot.slane %v675_v13, 4  ;;  %v681_v14 = vshll.u32 %v4929_v44, 16  ;;  %3847 = vmatpush3.bf16.msra.mxu1 %v4137_v30  ;;  %v4956_v9 = vcombine.low %v4789_v50, %v4798_v61  ;;  %v4140_v32 = vld [vmem:[%s5888_s1 + $0x1a0] sm:$0xff]  }
  0x7a   : > { %v668_v38 = vor.u32 %v667_v10, %v664_v62  ;;  %3848 = vmatprep.subr.bf16.mxu1 %v4139_v40  ;;  %v4958_v46 = vcombine.low %v952_v31, %v955_v0  ;;  %v4960_v56 = vcombine.low %v650_v2, %v660_v55  ;;  %v4966_v29 = vld [vmem:[%s4424_s12 + $0x80] sm:$0x1]  ;;  %v686_v13 = vshrl.u32 %v4943_v25, 16  ;;  %v4975_v40 = vld [vmem:[%s4424_s12 + $0x84] sm:$0xf] }
  0x7b   : > { %2245 = vmatmul.mubr.bf16.gmra.mrb[24].mxu1 %v4909_v26  ;;  %v678_v35 = vor.u32 %v677_v5, %v673_v6  ;;  %v683_v41 = vrot.slane %v681_v14, 5  ;;  %v689_v62 = vshll.u32 %v4943_v25, 16  ;;  %v959_v31 = vsel %vm4665_vm5, %v3364_v3, %v958_v1  ;;  %v4142_v3 = vld [vmem:[%s5888_s1 + $0x1e8] sm:$0xff]  }
  0x7c   : > { %2252 = vmatprep.mubr.bf16.mxu1 %v4765_v12  ;;  %v669_v30 = vrot.slane %v668_v38, 4  ;;  %v965_v2 = vrot.slane %v4745_v47, 5  ;;  %v695_v10 = vshll.u32 %v4952_v34, 16  ;;  %v962_v38 = vsel %vm4665_vm5, %v960_v28, %v961_v19  ;;  %v4148_v12 = vld [vmem:[%s5888_s1 + $0x1f8] sm:$0xff]  }
  0x7d   : > { %v679_v0 = vrot.slane %v678_v35, 4  ;;  %3849 = vmatpush3.bf16.msra.mxu1 %v4140_v32  ;;  %v688_v55 = vrot.slane %v686_v13, 4  ;;  %v691_v5 = vrot.slane %v689_v62, 5  ;;  %v699_v14 = vshrl.u32 %v4952_v34, 16  ;;  %v4143_v13 = vld [vmem:[%s5888_s1 + $0x1a8] sm:$0xff]  }
  0x7e   : > { %v697_v47 = vrot.slane %v695_v10, 5  ;;  %v705_v1 = vshll.u32 %v4966_v29, 16  ;;  %v674_v28 = vsel %vm4469_vm2, %v669_v30, %v673_v6  ;;  %v5000_v62 = vcombine.low %v4854_v21, %v4864_v58  ;;  %3850 = vmatprep.subr.bf16.mxu1 %v4142_v3 }
  0x7f   : > { %v684_v19 = vsel %vm4469_vm2, %v679_v0, %v683_v41  ;;  %v692_v35 = vor.u32 %v691_v5, %v688_v55  ;;  %v701_v32 = vrot.slane %v699_v14, 4  ;;  %v5002_v10 = vcombine.low %v959_v31, %v962_v38  ;;  %v4146_v0 = vld [vmem:[%s5888_s1 + $0x1f0] sm:$0xff]   ;;  %v5013_v14 = vld [vmem:[%s4424_s12 + $0x8c] sm:$0x1] }
  0x80   : > { %2124 = vmatmul.mubr.bf16.gmra.mrb[28].mxu0 %v4956_v9  ;;  %v968_v6 = vrot.slane %v4748_v48, 5  ;;  %v710_v41 = vshrl.u32 %v4975_v40, 16  ;;  %v5010_v55 = vcombine.low %v674_v28, %v684_v19  ;;  %v967_v5 = vrot.slane %v965_v2, 4 }
  0x81   : > { %2131 = vmatprep.mubr.bf16.mxu0 %v4960_v56  ;;  %v702_v30 = vor.u32 %v701_v32, %v697_v47  ;;  %3851 = vmatpush3.bf16.msra.mxu1 %v4143_v13  ;;  %v713_v31 = vshll.u32 %v4975_v40, 16  ;;  %v719_v38 = vshll.u32 %v4981_v17, 16  ;;  %v693_v48 = vrot.slane %v692_v35, 4 }
  0x82   : > { %v707_v32 = vrot.slane %v705_v1, 5  ;;  %v723_v13 = vshrl.u32 %v4981_v17, 16  ;;  %3852 = vmatprep.subr.bf16.mxu1 %v4146_v0  ;;  %v712_v23 = vrot.slane %v710_v41, 4  ;;  %v969_v35 = vsel %vm4665_vm5, %v967_v5, %v968_v6 }
  0x83   : > { %2253 = vmatmul.mubr.bf16.gmra.mrb[28].mxu1 %v4958_v46  ;;  %v703_v3 = vrot.slane %v702_v30, 4  ;;  %v715_v28 = vrot.slane %v713_v31, 5  ;;  %v721_v19 = vrot.slane %v719_v38, 5  ;;  %v972_v30 = vrot.slane %v4768_v18, 5 }
  0x84   : > { %2260 = vmatprep.mubr.bf16.mxu1 %v4836_v37  ;;  %v3365_v37 = vrot.slane %v4739_v27, 9  ;;  %v4147_v27 = vld [vmem:[%s5888_s1 + $0x1b0] sm:$0xff]   ;;  %v725_v16 = vrot.slane %v723_v13, 4  ;;  %v729_v41 = vshll.u32 %v5013_v14, 16  ;;  %v698_v0 = vsel %vm4469_vm2, %v693_v48, %v697_v47 }
  0x85   : > { %3853 = vmatpush3.bf16.msra.mxu1 %v4147_v27  ;;  %v708_v31 = vsel %vm4469_vm2, %v703_v3, %v707_v32  ;;  %v716_v38 = vor.u32 %v715_v28, %v712_v23  ;;  %v3366_v18 = vrot.slane %v4757_v4, 9  ;;  %v975_v6 = vrot.slane %v4774_v20, 5 }
  0x86   : > { %v966_v1 = vsel %vm4665_vm5, %v3365_v37, %v965_v2  ;;  %v726_v27 = vor.u32 %v725_v16, %v721_v19  ;;  %3854 = vmatprep.subr.bf16.mxu1 %v4148_v12  ;;  %v5043_v37 = vcombine.low %v4891_v39, %v4894_v52  ;;  %v5049_v5 = vcombine.low %v698_v0, %v708_v31 }
  0x87   : > { %v5045_v2 = vcombine.low %v966_v1, %v969_v35  ;;  %v974_v47 = vrot.slane %v972_v30, 4  ;;  %v731_v48 = vrot.slane %v729_v41, 5  ;;  %v717_v13 = vrot.slane %v716_v38, 4 }
  0x88   : > { %2132 = vmatmul.mubr.bf16.gmra.mrb[32].mxu0 %v5000_v62  ;;  %v727_v3 = vrot.slane %v726_v27, 4  ;;  %v973_v23 = vsel %vm4665_vm5, %v3366_v18, %v972_v30  ;;  %v979_v16 = vrot.slane %v4798_v61, 5  ;;  %v5066_v20 = vcombine.low %v4943_v25, %v4952_v34 }
  0x89   : > { %2139 = vmatprep.mubr.bf16.mxu0 %v5010_v55  ;;  %3855 = vmatpush3.bf16.msra.mxu1 %v4149_v53  ;;  %v976_v53 = vsel %vm4665_vm5, %v974_v47, %v975_v6  ;;  %v722_v4 = vsel %vm4469_vm2, %v717_v13, %v721_v19  ;;  %v3367_v28 = vrot.slane %v4789_v50, 9  ;;  %v982_v30 = vrot.slane %v4818_v22, 5 }
  0x8a   : > { %v732_v12 = vsel %vm4469_vm2, %v727_v3, %v731_v48  ;;  %v5068_v32 = vcombine.low %v973_v23, %v976_v53  ;;  %v981_v35 = vrot.slane %v979_v16, 4  ;;  %v986_v50 = vrot.slane %v4864_v58, 5  ;;  %v4138_v48 = vld [vmem:[%s5888_s1 + $0x208] sm:$0xff]   ;;  %v4150_v53 = vld [vmem:[%s5888_s1 + $0x220] sm:$0xff]  }
  0x8b   : > { %2261 = vmatmul.mubr.bf16.gmra.mrb[32].mxu1 %v5002_v10  ;;  %v5071_v1 = vcombine.low %v722_v4, %v732_v12  ;;  %v980_v61 = vsel %vm4665_vm5, %v3367_v28, %v979_v16  ;;  %v5085_v41 = vcombine.low %v4975_v40, %v4981_v17  ;;  %v3368_v0 = vrot.slane %v4854_v21, 9 }
  0x8c   : > { %2268 = vmatprep.mubr.bf16.mxu1 %v4901_v59  ;;  %v983_v19 = vsel %vm4665_vm5, %v981_v35, %v982_v30  ;;  %v988_v31 = vrot.slane %v986_v50, 4  ;;  %v989_v38 = vrot.slane %v4875_v57, 5  ;;  %v993_v18 = vrot.slane %v4894_v52, 5  ;;  %v4283_v35 = vld [vmem:[%s4424_s12 + $0x94] sm:$0xf] }
  0x8d   : > { %v5087_v22 = vcombine.low %v980_v61, %v983_v19  ;;  %v987_v58 = vsel %vm4665_vm5, %v3368_v0, %v986_v50  ;;  %v3369_v57 = vrot.slane %v4891_v39, 9  ;;  %v996_v47 = vrot.slane %v4929_v44, 5  ;;  %v4141_v44 = vld [vmem:[%s5888_s1 + $0x210] sm:$0xff]  }
  0x8e   : > { %v990_v27 = vsel %vm4665_vm5, %v988_v31, %v989_v38  ;;  %v995_v6 = vrot.slane %v993_v18, 4  ;;  %v1000_v52 = vrot.slane %v4952_v34, 5  ;;  %v1003_v3 = vrot.slane %v4966_v29, 5  ;;  %v4144_v34 = vld [vmem:[%s5888_s1 + $0x218] sm:$0xff]   ;;  %v4152_v61 = vld [vmem:[%s5888_s1 + $0x230] sm:$0xff]  }
  0x8f   : > { %v5100_v21 = vcombine.low %v987_v58, %v990_v27  ;;  %v1007_v23 = vrot.slane %v4981_v17, 5  ;;  %v3371_v4 = vrot.slane %v4975_v40, 9  ;;  %v1010_v28 = vrot.slane %v5013_v14, 5  ;;  %v4151_v17 = vld [vmem:[%s5888_s1 + $0x228] sm:$0xff]   ;;  %v4284_v50 = vld [vmem:[%s4424_s12 + $0x90] sm:$0xf] }
  0x90   : > { %2140 = vmatmul.mubr.bf16.gmra.mrb[36].mxu0 %v5043_v37  ;;  %v997_v39 = vsel %vm4665_vm5, %v995_v6, %v996_v47  ;;  %v1002_v13 = vrot.slane %v1000_v52, 4  ;;  %v1014_v30 = vrot.slane %v4283_v35, 5  ;;  %v3372_v0 = vrot.slane %v4284_v50, 9  ;;  %v4285_v38 = vld [vmem:[%s4424_s12 + $0x98] sm:$0x1] }
  0x91   : > { %2147 = vmatprep.mubr.bf16.mxu0 %v5049_v5  ;;  %v1009_v12 = vrot.slane %v1007_v23, 4  ;;  %v1008_v40 = vsel %vm4665_vm5, %v3371_v4, %v1007_v23  ;;  %v1017_v58 = vrot.slane %v4285_v38, 5  ;;  %v4153_v27 = vld [vmem:[%s5888_s1 + $0x238] sm:$0xff]   ;;  %v4286_v6 = vld [vmem:[%s4424_s12 + $0xa0] sm:$0xf] }
  0x92   : > { %v1004_v29 = vsel %vm4665_vm5, %v1002_v13, %v1003_v3  ;;  %v1016_v31 = vrot.slane %v1014_v30, 4  ;;  %v1021_v47 = vrot.slane %v4286_v6, 5  ;;  %v4290_v23 = vld [vmem:[%s4424_s12 + $0xa8] sm:$0xf] }
  0x93   : > { %2269 = vmatmul.mubr.bf16.gmra.mrb[36].mxu1 %v5045_v2  ;;  %v1011_v14 = vsel %vm4665_vm5, %v1009_v12, %v1010_v28  ;;  %v4291_v12 = vld [vmem:[%s4424_s12 + $0xb0] sm:$0x1] }
  0x94   : > { %2276 = vmatprep.mubr.bf16.mxu1 %v4956_v9  ;;  %v5158_v19 = vcombine.low %v1008_v40, %v1011_v14  ;;  %v1031_v28 = vrot.slane %v4291_v12, 5  ;;  %v4292_v14 = vld [vmem:[%s4424_s12 + $0xb8] sm:$0xf] }
  0x95   : > { %v1035_v35 = vrot.slane %v4292_v14, 5 }
  0x98   : > { %2148 = vmatmul.mubr.bf16.gmra.mrb[40].mxu0 %v5066_v20 }
  0x99   : > { %2155 = vmatprep.mubr.bf16.mxu0 %v5071_v1 }
  0x9b   : > { %2277 = vmatmul.mubr.bf16.gmra.mrb[40].mxu1 %v5068_v32 }
  0x9c   : > { %2284 = vmatprep.mubr.bf16.mxu1 %v5000_v62 }
  0xa0   : > { %2156 = vmatmul.mubr.bf16.gmra.mrb[44].mxu0 %v5085_v41 }
  0xa1   : > { %2389 = vmatprep.mubr.bf16.mxu0 %v4839_v42  ;;  %v994_v42 = vsel %vm4665_vm5, %v3369_v57, %v993_v18  ;;  %v1015_v18 = vsel %vm4665_vm5, %v3372_v0, %v1014_v30  ;;  %v1018_v57 = vsel %vm4665_vm5, %v1016_v31, %v1017_v58  ;;  %v324_v30 = vld [vmem:[%s4424_s12 + $0xc0] sm:$0xf]  ;;  %v4293_v31 = vld [vmem:[%s4424_s12 + $0xb4] sm:$0xf]  ;;  %v1037_v58 = vrot.slane %v1035_v35, 4 }
  0xa2   : > { %v3375_v38 = vrot.slane %v4293_v31, 9 }
  0xa3   : > { %2285 = vmatmul.mubr.bf16.gmra.mrb[44].mxu1 %v5087_v22 }
  0xa4   : > { %2292 = vmatprep.mubr.bf16.mxu1 %v5043_v37 }
  0xa8   : > { %2390 = vmatmul.mubr.bf16.vlgmr.msra.gmra.mrb[48].mxu0 %v4550_v60  ;;  %v5120_v60 = vcombine.low %v994_v42, %v997_v39  ;;  %v4287_v42 = vld [vmem:[%s4424_s12 + $0x9c] sm:$0xf] }
  0xa9   : > { %3977 = vmatpush3.bf16.msra.mxu0 %v4907_v8  ;;  %2397 = vmatprep.mubr.bf16.mxu0 %v4909_v26  ;;  %v3370_v8 = vrot.slane %v4943_v25, 9  ;;  %v3373_v39 = vrot.slane %v4287_v42, 9  ;;  %v5918_v42 = vld [vmem:[#allocation7_spill] sm:$0xff] }
  0xaa   : > { %3978 = vmatprep.subr.bf16.mxu0 %v4138_v48 }
  0xab   : > { %2293 = vmatmul.mubr.bf16.gmra.mrb[48].mxu1 %v5100_v21  ;;  %v1001_v25 = vsel %vm4665_vm5, %v3370_v8, %v1000_v52  ;;  %v1023_v52 = vrot.slane %v1021_v47, 4  ;;  %v1022_v13 = vsel %vm4665_vm5, %v3373_v39, %v1021_v47  ;;  %v5919_v39 = vld [vmem:[#allocation9_spill] sm:$0xff] }
  0xac   : > { %2300 = vmatprep.mubr.bf16.mxu1 %v5066_v20  ;;  %v5139_v16 = vcombine.low %v1001_v25, %v1004_v29 }
  0xad   : > { %3979 = vmatpush3.bf16.msra.mxu0 %v4138_v48  ;;  %v5174_v48 = vcombine.low %v1015_v18, %v1018_v57  ;;  %v1036_v57 = vsel %vm4665_vm5, %v3375_v38, %v1035_v35 }
  0xae   : > { %3980 = vmatprep.subr.bf16.mxu0 %v4141_v44 }
  0xb0   : > { %2398 = vmatmul.mubr.bf16.gmra.mrb[52].mxu0 %v4623_v7 }
  0xb1   : > { %2405 = vmatprep.mubr.bf16.mxu0 %v4958_v46  ;;  %3981 = vmatpush3.bf16.msra.mxu0 %v4141_v44  ;;  %v4288_v44 = vld [vmem:[%s4424_s12 + $0xa4] sm:$0x1] }
  0xb2   : > { %3982 = vmatprep.subr.bf16.mxu0 %v4144_v34  ;;  %v1024_v8 = vrot.slane %v4288_v44, 5  ;;  %v1143_v44 = vshrl.u32 %v324_v30, 16 }
  0xb3   : > { %2301 = vmatmul.mubr.bf16.gmra.mrb[52].mxu1 %v5120_v60 }
  0xb4   : > { %2308 = vmatprep.mubr.bf16.mxu1 %v5085_v41  ;;  %v1025_v3 = vsel %vm4665_vm5, %v1023_v52, %v1024_v8  ;;  %v5920_v52 = vld [vmem:[#allocation11_spill] sm:$0xff]  ;;  %v1146_v8 = vshll.u32 %v324_v30, 16 }
  0xb5   : > { %3983 = vmatpush3.bf16.msra.mxu0 %v4144_v34  ;;  %v4289_v34 = vld [vmem:[%s4424_s12 + $0xac] sm:$0xf]  ;;  %v5187_v29 = vcombine.low %v1022_v13, %v1025_v3 }
  0xb6   : > { %3984 = vmatprep.subr.bf16.mxu0 %v4150_v53  ;;  %v1028_v25 = vrot.slane %v4289_v34, 5  ;;  %v326_v34 = vld [vmem:[%s4424_s12 + $0xc8] sm:$0x1] }
  0xb7   : > { %v1192_v12 = vrot.slane %v326_v34, 5  ;;  %v1162_v35 = vshll.u32 %v326_v34, 16 }
  0xb8   : > { %2406 = vmatmul.mubr.bf16.gmra.mrb[56].mxu0 %v4687_v24  ;;  %v1030_v4 = vrot.slane %v1028_v25, 4 }
  0xb9   : > { %2413 = vmatprep.mubr.bf16.mxu0 %v5002_v10  ;;  %3985 = vmatpush3.bf16.msra.mxu0 %v4150_v53  ;;  %v3374_v53 = vrot.slane %v4290_v23, 9  ;;  %v1145_v23 = vrot.slane %v1143_v44, 4 }
  0xba   : > { %3986 = vmatprep.subr.bf16.mxu0 %v4151_v17  ;;  %v1032_v40 = vsel %vm4665_vm5, %v1030_v4, %v1031_v28 }
  0xbb   : > { %2309 = vmatmul.mubr.bf16.gmra.mrb[56].mxu1 %v5139_v16 }
  0xbc   : > { %2316 = vmatprep.mubr.bf16.mxu1 %v4516_v15 }
  0xbd   : > { %3987 = vmatpush3.bf16.msra.mxu0 %v4151_v17  ;;  %v1029_v17 = vsel %vm4665_vm5, %v3374_v53, %v1028_v25  ;;  %v3394_v25 = vrot.slane %v324_v30, 9  ;;  %v1148_v53 = vrot.slane %v1146_v8, 5  ;;  %v5925_v8 = vld [vmem:[#allocation10_spill] sm:$0xff] }
  0xbe   : > { %3988 = vmatprep.subr.bf16.mxu0 %v4152_v61  ;;  %v5202_v50 = vcombine.low %v1029_v17, %v1032_v40  ;;  %v5924_v17 = vld [vmem:[#allocation8_spill] sm:$0xff] }
  0xc0   : > { %2414 = vmatmul.mubr.bf16.gmra.mrb[60].mxu0 %v4785_v43 }
  0xc1   : > { %2421 = vmatprep.mubr.bf16.mxu0 %v5045_v2  ;;  %3989 = vmatpush3.bf16.msra.mxu0 %v4152_v61  ;;  %v325_v61 = vld [vmem:[%s4424_s12 + $0xc4] sm:$0xf] }
  0xc2   : > { %3990 = vmatprep.subr.bf16.mxu0 %v4153_v27  ;;  %v5204_v0 = vcombine.low %v324_v30, %v325_v61  ;;  %v1156_v13 = vshrl.u32 %v325_v61, 16  ;;  %v1152_v3 = vshll.u32 %v325_v61, 16 }
  0xc3   : > { %2317 = vmatmul.mubr.bf16.gmra.mrb[60].mxu1 %v5158_v19 }
  0xc4   : > { %2324 = vmatprep.mubr.bf16.mxu1 %v4575_v11  ;;  %v1158_v28 = vrot.slane %v1156_v13, 4 }
  0xc5   : > { %3991 = vmatpush3.bf16.msra.mxu0 %v4153_v27  ;;  %v4294_v27 = vld [vmem:[%s4424_s12 + $0xbc] sm:$0x1] }
  0xc6   : > { %v1038_v18 = vrot.slane %v4294_v27, 5 }
  0xc8   : > { %2422 = vmatmul.mubr.bf16.gmra.mrb[64].mxu0 %v4823_v51  ;;  %v1039_v6 = vsel %vm4665_vm5, %v1037_v58, %v1038_v18 }
  0xc9   : > { %2429 = vmatprep.mubr.bf16.mxu0 %v5068_v32  ;;  %v5216_v47 = vcombine.low %v1036_v57, %v1039_v6 }
  0xcb   : > { %2325 = vmatmul.mubr.bf16.gmra.mrb[64].mxu1 %v5174_v48 }
  0xcc   : > { %2332 = vmatprep.mubr.bf16.mxu1 %v4605_v54 }
  0xd0   : > { %2430 = vmatmul.mubr.bf16.gmra.mrb[68].mxu0 %v4871_v33 }
  0xd1   : > { %2437 = vmatprep.mubr.bf16.mxu0 %v5087_v22 }
  0xd3   : > { %2333 = vmatmul.mubr.bf16.gmra.mrb[68].mxu1 %v5187_v29 }
  0xd4   : > { %2340 = vmatprep.mubr.bf16.mxu1 %v4729_v36 }
  0xd8   : > { %2438 = vmatmul.mubr.bf16.gmra.mrb[72].mxu0 %v4913_v63 }
  0xd9   : > { %2445 = vmatprep.mubr.bf16.mxu0 %v5100_v21 }
  0xdb   : > { %2341 = vmatmul.mubr.bf16.gmra.mrb[72].mxu1 %v5202_v50 }
  0xdc   : > { %2348 = vmatprep.mubr.bf16.mxu1 %v5204_v0 }
  0xe0   : > { %2446 = vmatmul.mubr.bf16.gmra.mrb[76].mxu0 %v4960_v56 }
  0xe1   : > { %2453 = vmatprep.mubr.bf16.mxu0 %v5120_v60 }
  0xe3   : > { %2349 = vmatmul.mubr.bf16.gmra.mrb[76].mxu1 %v5216_v47 }
  0xe4   : > { %2550 = vmatprep.mubr.bf16.mxu1 %v4623_v7  ;;  %v5921_v7 = vld [vmem:[#allocation5_spill] sm:$0xff] }
  0xe8   : > { %2454 = vmatmul.mubr.bf16.gmra.mrb[80].mxu0 %v5010_v55 }
  0xe9   : > { %2461 = vmatprep.mubr.bf16.mxu0 %v5139_v16 }
  0xeb   : > { %2551 = vmatmul.mubr.bf16.vlgmr.msra.gmra.mrb[80].mxu1 %v5918_v42 }
  0xec   : > { %2558 = vmatprep.mubr.bf16.mxu1 %v4687_v24  ;;  %v5922_v24 = vld [vmem:[#allocation12_spill] sm:$0xff] }
  0xf0   : > { %2462 = vmatmul.mubr.bf16.gmra.mrb[84].mxu0 %v5049_v5 }
  0xf1   : > { %2469 = vmatprep.mubr.bf16.mxu0 %v5158_v19 }
  0xf3   : > { %2559 = vmatmul.mubr.bf16.gmra.mrb[84].mxu1 %v5919_v39 }
  0xf4   : > { %2566 = vmatprep.mubr.bf16.mxu1 %v4785_v43  ;;  %v5923_v43 = vld [vmem:[#allocation6_spill] sm:$0xff] }
  0xf8   : > { %2470 = vmatmul.mubr.bf16.gmra.mrb[88].mxu0 %v5071_v1 }
  0xf9   : > { %2477 = vmatprep.mubr.bf16.mxu0 %v5174_v48 }
  0xfb   : > { %2567 = vmatmul.mubr.bf16.gmra.mrb[88].mxu1 %v5920_v52 }
  0xfc   : > { %2574 = vmatprep.mubr.bf16.mxu1 %v4823_v51  ;;  %v1189_v51 = vrot.slane %v325_v61, 5 }
  0xfe   : > { %v1191_v4 = vrot.slane %v1189_v51, 4 }
 0x100   : > { %2478 = vmatmul.mubr.bf16.gmra.mrb[92].mxu0 %v5921_v7  ;;  %v1193_v40 = vsel %vm4665_vm5, %v1191_v4, %v1192_v12 }
 0x101   : > { %2485 = vmatprep.mubr.bf16.mxu0 %v5187_v29 }
 0x103   : > { %2575 = vmatmul.mubr.bf16.gmra.mrb[92].mxu1 %v5922_v24 }
 0x104   : > { %2582 = vmatprep.mubr.bf16.mxu1 %v4871_v33  ;;  %v1154_v33 = vrot.slane %v1152_v3, 5 }
 0x106   : > { %v1159_v14 = vor.u32 %v1158_v28, %v1154_v33 }
 0x108   : > { %2486 = vmatmul.mubr.bf16.gmra.mrb[96].mxu0 %v5923_v43  ;;  %v1160_v57 = vrot.slane %v1159_v14, 4 }
 0x109   : > { %2493 = vmatprep.mubr.bf16.mxu0 %v5202_v50 }
 0x10b   : > { %2583 = vmatmul.mubr.bf16.gmra.mrb[96].mxu1 %v4901_v59  ;;  %v1149_v59 = vor.u32 %v1148_v53, %v1145_v23 }
 0x10c   : > { %2590 = vmatprep.mubr.bf16.mxu1 %v4913_v63  ;;  %v1190_v63 = vsel %vm4665_vm5, %v3394_v25, %v1189_v51 }
 0x10d   : > { %v5251_v38 = vcombine.low %v1190_v63, %v1193_v40  ;;  %v1150_v58 = vrot.slane %v1149_v59, 4 }
 0x10f   : > { %v1155_v13 = vsel %vm4469_vm2, %v1150_v58, %v1154_v33 }
 0x110   : > { %2494 = vmatmul.mubr.bf16.gmra.mrb[100].mxu0 %v5924_v17 }
 0x111   : > { %2501 = vmatprep.mubr.bf16.mxu0 %v5216_v47 }
 0x113   : > { %2591 = vmatmul.mubr.bf16.gmra.mrb[100].mxu1 %v4956_v9 }
 0x114   : > { %2598 = vmatprep.mubr.bf16.mxu1 %v4960_v56  ;;  %v1164_v56 = vrot.slane %v1162_v35, 5 }
 0x116   : > { %v1165_v51 = vsel %vm4469_vm2, %v1160_v57, %v1164_v56 }
 0x117   : > { %v5269_v34 = vcombine.low %v1155_v13, %v1165_v51 }
 0x118   : > { %v3520_v30 = vpop.f32.mrb[0].mxu0  ;;  %v3592_v61 = vpop.f32.mrb[0].mxu1  ;;  %2502 = vmatmul.mubr.bf16.gmra.mrb[104].mxu0 %v5925_v8 }
 0x119   : > { %v3521_v31 = vpop.f32.mrb[1].mxu0  ;;  %v3593_v9 = vpop.f32.mrb[1].mxu1  ;;  %2509 = vmatprep.mubr.bf16.mxu0 %v5251_v38 }
 0x11a   : > { %v5253_v27 = vadd.f32 %v3521_v31, %v3520_v30  ;;  %v3523_v18 = vpop.f32.mrb[2].mxu0  ;;  %v5255_v6 = vadd.f32 %v3593_v9, %v3592_v61  ;;  %v3595_v42 = vpop.f32.mrb[2].mxu1 }
 0x11b   : > { %v3524_v39 = vpop.f32.mrb[3].mxu0  ;;  %v3596_v52 = vpop.f32.mrb[3].mxu1  ;;  %2599 = vmatmul.mubr.bf16.gmra.mrb[104].mxu1 %v5000_v62 }
 0x11c   : > { %v5257_v24 = vadd.f32 %v3524_v39, %v3523_v18  ;;  %v5259_v44 = vadd.f32 %v3596_v52, %v3595_v42  ;;  %2606 = vmatprep.mubr.bf16.mxu1 %v5010_v55 }
 0x120   : > { %v3526_v3 = vpop.f32.mrb[4].mxu0  ;;  %v3598_v12 = vpop.f32.mrb[4].mxu1  ;;  %2510 = vmatmul.mubr.bf16.gmra.mrb[108].mxu0 %v5269_v34 }
 0x121   : > { %v3527_v25 = vpop.f32.mrb[5].mxu0  ;;  %v3599_v28 = vpop.f32.mrb[5].mxu1  ;;  %3992 = vmatprep.mubr.bf16.mxu0 %v4909_v26 }
 0x122   : > { %v5271_v23 = vadd.f32 %v3527_v25, %v3526_v3  ;;  %v3529_v53 = vpop.f32.mrb[6].mxu0  ;;  %v5277_v55 = vadd.f32 %v3599_v28, %v3598_v12  ;;  %v3601_v33 = vpop.f32.mrb[6].mxu1 }
 0x123   : > { %v3530_v4 = vpop.f32.mrb[7].mxu0  ;;  %2607 = vmatmul.mubr.bf16.gmra.mrb[108].mxu1 %v5043_v37  ;;  %v3602_v59 = vpop.f32.mrb[7].mxu1 }
 0x124   : > { %v5273_v62 = vadd.f32 %v3530_v4, %v3529_v53  ;;  %2614 = vmatprep.mubr.bf16.mxu1 %v5049_v5  ;;  %v5281_v63 = vadd.f32 %v3602_v59, %v3601_v33 }
 0x128   : > { %v3532_v40 = vpop.f32.mrb[8].mxu0  ;;  %3993 = vmatmul.mubr.bf16.vlgmr.msra.gmra.mrb[112].mxu0 %v4958_v46 }
 0x129   : > { %v3533_v14 = vpop.f32.mrb[9].mxu0  ;;  %3996 = vmatprep.mubr.bf16.mxu0 %v5002_v10 }
 0x12a   : > { %v5285_v35 = vadd.f32 %v3533_v14, %v3532_v40  ;;  %v3535_v30 = vpop.f32.mrb[10].mxu0  ;;  %v3604_v5 = vpop.f32.mrb[8].mxu1  ;;  %v5327_v14 = vld [vmem:[%s4424_s12 + $0xcc] sm:$0xf] }
 0x12b   : > { %2615 = vmatmul.mubr.bf16.gmra.mrb[112].mxu1 %v5066_v20  ;;  %v3536_v37 = vpop.f32.mrb[11].mxu0  ;;  %v3605_v26 = vpop.f32.mrb[9].mxu1 }
 0x12c   : > { %2622 = vmatprep.mubr.bf16.mxu1 %v5071_v1  ;;  %v5289_v61 = vadd.f32 %v3536_v37, %v3535_v30  ;;  %v5291_v31 = vadd.f32 %v3605_v26, %v3604_v5  ;;  %v3607_v58 = vpop.f32.mrb[10].mxu1  ;;  %v5330_v30 = vld [vmem:[%s4424_s12 + $0xd0] sm:$0xf]  ;;  %v1240_v37 = vshll.u32 %v5327_v14, 16 }
 0x12d   : > { %v3608_v9 = vpop.f32.mrb[11].mxu1  ;;  %v1246_v5 = vshll.u32 %v5330_v30, 16  ;;  %v1250_v26 = vshrl.u32 %v5330_v30, 16 }
 0x12e   : > { %v5293_v18 = vadd.f32 %v3608_v9, %v3607_v58 }
 0x130   : > { %3997 = vmatmul.mubr.bf16.gmra.mrb[116].mxu0 %v5045_v2  ;;  %v5314_v2 = vld [vmem:[%s5889_s2] ss:$0 sm:$0xff] }
 0x131   : > { %v3538_v20 = vpop.f32.mrb[12].mxu0  ;;  %4000 = vmatprep.mubr.bf16.mxu0 %v5068_v32  ;;  %v2073_v28 = vadd.f32 %v5257_v24, %v5314_v2  ;;  %v1237_v24 = vshrl.u32 %v5327_v14, 16 }
 0x132   : > { %v3539_v46 = vpop.f32.mrb[13].mxu0 }
 0x133   : > { %2623 = vmatmul.mubr.bf16.gmra.mrb[116].mxu1 %v5085_v41  ;;  %v5297_v57 = vadd.f32 %v3539_v46, %v3538_v20  ;;  %v3541_v1 = vpop.f32.mrb[14].mxu0 }
 0x134   : > { %2630 = vmatprep.mubr.bf16.mxu1 %v5921_v7  ;;  %v3542_v10 = vpop.f32.mrb[15].mxu0 }
 0x135   : > { %v5301_v56 = vadd.f32 %v3542_v10, %v3541_v1 }
 0x136   : > { %v3610_v42 = vpop.f32.mrb[12].mxu1 }
 0x137   : > { %v3611_v39 = vpop.f32.mrb[13].mxu1 }
 0x138   : > { %v5303_v52 = vadd.f32 %v3611_v39, %v3610_v42  ;;  %v3613_v13 = vpop.f32.mrb[14].mxu1  ;;  %4001 = vmatmul.mubr.bf16.gmra.mrb[120].mxu0 %v5087_v22  ;;  %v1239_v39 = vrot.slane %v1237_v24, 4  ;;  %v2086_v24 = vadd.f32 %v5285_v35, %v5314_v2  ;;  %v1283_v35 = vrot.slane %v5330_v30, 5 }
 0x139   : > { %v3614_v51 = vpop.f32.mrb[15].mxu1  ;;  %4004 = vmatprep.mubr.bf16.mxu0 %v5100_v21 }
 0x13a   : > { %v5305_v41 = vadd.f32 %v3614_v51, %v3613_v13  ;;  %v1242_v13 = vrot.slane %v1240_v37, 5  ;;  %v1248_v51 = vrot.slane %v1246_v5, 5 }
 0x13b   : > { %2631 = vmatmul.mubr.bf16.gmra.mrb[120].mxu1 %v4516_v15  ;;  %v3544_v32 = vpop.f32.mrb[16].mxu0  ;;  %v2070_v15 = vadd.f32 %v5253_v27, %v5314_v2 }
 0x13c   : > { %2638 = vmatprep.mubr.bf16.mxu1 %v5923_v43  ;;  %v3545_v3 = vpop.f32.mrb[17].mxu0 }
 0x13d   : > { %v5318_v53 = vadd.f32 %v3545_v3, %v3544_v32  ;;  %v3547_v43 = vpop.f32.mrb[18].mxu0  ;;  %v1252_v32 = vrot.slane %v1250_v26, 4 }
 0x13e   : > { %v3632_v7 = vpop.f32.mrb[16].mxu1  ;;  %v3548_v21 = vpop.f32.mrb[19].mxu0 }
 0x13f   : > { %v3633_v25 = vpop.f32.mrb[17].mxu1  ;;  %v5324_v59 = vadd.f32 %v3548_v21, %v3547_v43  ;;  %v1243_v43 = vor.u32 %v1242_v13, %v1239_v39  ;;  %v1285_v13 = vrot.slane %v1283_v35, 4 }
 0x140   : > { %v3634_v22 = vadd.f32 %v3633_v25, %v3632_v7  ;;  %v3635_v4 = vpop.f32.mrb[18].mxu1  ;;  %4005 = vmatmul.mubr.bf16.gmra.mrb[124].mxu0 %v5120_v60  ;;  %v2078_v60 = vadd.f32 %v5271_v23, %v5314_v2  ;;  %v2081_v7 = vadd.f32 %v5273_v62, %v5314_v2  ;;  %v329_v23 = vld [vmem:[%s4424_s12 + $0xd4] sm:$0x1]  ;;  %s237_s12 = sand.u32 1, %s4309_s18  }
 0x141   : > { %v3636_v12 = vpop.f32.mrb[19].mxu1  ;;  %4008 = vmatprep.mubr.bf16.mxu0 %v5139_v16  ;;  %v1256_v21 = vshll.u32 %v329_v23, 16  ;;  %v2105_v49 = vadd.f32 %v5324_v59, %v5314_v2  ;;  %s3325_s15 = sshll.u32 %s237_s12, 6 }
 0x142   : > { %v5322_v33 = vadd.f32 %v3634_v22, %v2070_v15  ;;  %v3637_v40 = vadd.f32 %v3636_v12, %v3635_v4  ;;  %v1253_v4 = vor.u32 %v1252_v32, %v1248_v51  ;;  %v1286_v32 = vrot.slane %v329_v23, 5  ;;  %s5711_s20 = scalar_lea.vmem [#allocation3], %s3325_s15 }
 0x143   : > { %2639 = vmatmul.mubr.bf16.gmra.mrb[124].mxu1 %v4575_v11  ;;  %v3550_v58 = vpop.f32.mrb[20].mxu0 }
 0x144   : > { %v5334_v27 = vadd.f32 %v3637_v40, %v2073_v28  ;;  %2646 = vmatprep.mubr.bf16.mxu1 %v5924_v17  ;;  %v3551_v20 = vpop.f32.mrb[21].mxu0 }
 0x145   : > { %v5344_v46 = vadd.f32 %v3551_v20, %v3550_v58  ;;  %v3553_v16 = vpop.f32.mrb[22].mxu0  ;;  %v2089_v20 = vadd.f32 %v5289_v61, %v5314_v2 }
 0x146   : > { %v3638_v9 = vpop.f32.mrb[20].mxu1  ;;  %v3554_v10 = vpop.f32.mrb[23].mxu0 }
 0x147   : > { %v3639_v11 = vpop.f32.mrb[21].mxu1  ;;  %v5350_v25 = vadd.f32 %v3554_v10, %v3553_v16 }
 0x148   : > { %v3640_v17 = vadd.f32 %v3639_v11, %v3638_v9  ;;  %v3641_v1 = vpop.f32.mrb[22].mxu1  ;;  %4009 = vmatmul.mubr.bf16.gmra.mrb[128].mxu0 %v5158_v19  ;;  %v1254_v9 = vrot.slane %v1253_v4, 4 }
 0x149   : > { %v3642_v42 = vpop.f32.mrb[23].mxu1  ;;  %4012 = vmatprep.mubr.bf16.mxu0 %v5174_v48  ;;  %v1258_v48 = vrot.slane %v1256_v21, 5  ;;  %v2097_v21 = vadd.f32 %v5301_v56, %v5314_v2  ;;  %v1287_v56 = vsel %vm4665_vm5, %v1285_v13, %v1286_v32  ;;  %v2113_v32 = vadd.f32 %v5350_v25, %v5314_v2 }
 0x14a   : > { %v5348_v3 = vadd.f32 %v3640_v17, %v2078_v60  ;;  %v3643_v15 = vadd.f32 %v3642_v42, %v3641_v1 }
 0x14b   : > { %2647 = vmatmul.mubr.bf16.gmra.mrb[128].mxu1 %v4605_v54  ;;  %v3556_v62 = vpop.f32.mrb[24].mxu0  ;;  %v1259_v1 = vsel %vm4469_vm2, %v1254_v9, %v1258_v48 }
 0x14c   : > { %v5355_v22 = vadd.f32 %v3643_v15, %v2081_v7  ;;  %2654 = vmatprep.mubr.bf16.mxu1 %v5925_v8  ;;  %v3557_v28 = vpop.f32.mrb[25].mxu0  ;;  %v1244_v8 = vrot.slane %v1243_v43, 4  ;;  %v2094_v7 = vadd.f32 %v5297_v57, %v5314_v2 }
 0x14d   : > { %v5361_v37 = vadd.f32 %v3557_v28, %v3556_v62  ;;  %v3559_v19 = vpop.f32.mrb[26].mxu0 }
 0x14e   : > { %v3644_v12 = vpop.f32.mrb[24].mxu1  ;;  %v3560_v26 = vpop.f32.mrb[27].mxu0  ;;  %v1249_v61 = vsel %vm4469_vm2, %v1244_v8, %v1248_v51 }
 0x14f   : > { %v3645_v40 = vpop.f32.mrb[25].mxu1  ;;  %v5367_v60 = vadd.f32 %v3560_v26, %v3559_v19  ;;  %v3397_v51 = vcombine.low %v1249_v61, %v1259_v1 }
 0x150   : > { %v3646_v54 = vadd.f32 %v3645_v40, %v3644_v12  ;;  %v3647_v5 = vpop.f32.mrb[26].mxu1  ;;  %4013 = vmatmul.mubr.bf16.gmra.mrb[132].mxu0 %v5187_v29  ;;  %v3398_v29 = vrot.slane %v5327_v14, 9 }
 0x151   : > { %v3648_v58 = vpop.f32.mrb[27].mxu1  ;;  %4016 = vmatprep.mubr.bf16.mxu0 %v5202_v50 }
 0x152   : > { %v5365_v11 = vadd.f32 %v3646_v54, %v2086_v24  ;;  %v3649_v17 = vadd.f32 %v3648_v58, %v3647_v5  ;;  %v1284_v23 = vsel %vm4665_vm5, %v3398_v29, %v1283_v35 }
 0x153   : > { %2655 = vmatmul.mubr.bf16.gmra.mrb[132].mxu1 %v4729_v36  ;;  %v3562_v10 = vpop.f32.mrb[28].mxu0  ;;  %v3399_v5 = vcombine.low %v1284_v23, %v1287_v56 }
 0x154   : > { %v5372_v16 = vadd.f32 %v3649_v17, %v2089_v20  ;;  %2662 = vmatprep.mubr.bf16.mxu1 %v5269_v34  ;;  %v3563_v39 = vpop.f32.mrb[29].mxu0 }
 0x155   : > { %v5383_v34 = vadd.f32 %v3563_v39, %v3562_v10  ;;  %v3565_v15 = vpop.f32.mrb[30].mxu0  ;;  %v2110_v10 = vadd.f32 %v5344_v46, %v5314_v2 }
 0x156   : > { %v3650_v42 = vpop.f32.mrb[28].mxu1  ;;  %v3566_v4 = vpop.f32.mrb[31].mxu0 }
 0x157   : > { %v3651_v36 = vpop.f32.mrb[29].mxu1  ;;  %v5389_v12 = vadd.f32 %v3566_v4, %v3565_v15 }
 0x158   : > { %v3652_v50 = vadd.f32 %v3651_v36, %v3650_v42  ;;  %v3653_v43 = vpop.f32.mrb[30].mxu1  ;;  %4017 = vmatmul.mubr.bf16.gmra.mrb[136].mxu0 %v5216_v47  ;;  %v2102_v47 = vadd.f32 %v5318_v53, %v5314_v2 }
 0x159   : > { %v3654_v45 = vpop.f32.mrb[31].mxu1  ;;  %4020 = vmatprep.mubr.bf16.mxu0 %v5251_v38 }
 0x15a   : > { %v5387_v62 = vadd.f32 %v3652_v50, %v2094_v7  ;;  %v3655_v28 = vadd.f32 %v3654_v45, %v3653_v43 }
 0x15b   : > { %2663 = vmatmul.mubr.bf16.gmra.mrb[136].mxu1 %v5204_v0  ;;  %v3568_v40 = vpop.f32.mrb[32].mxu0  ;;  %v3396_v0 = vcombine.low %v5327_v14, %v5330_v30 }
 0x15c   : > { %v5393_v57 = vadd.f32 %v3655_v28, %v2097_v21  ;;  %2670 = vmatprep.mubr.bf16.mxu1 %v3397_v51  ;;  %v3569_v54 = vpop.f32.mrb[33].mxu0  ;;  %v2118_v21 = vadd.f32 %v5361_v37, %v5314_v2 }
 0x15d   : > { %v5404_v26 = vadd.f32 %v3569_v54, %v3568_v40  ;;  %v3571_v58 = vpop.f32.mrb[34].mxu0  ;;  %v2121_v54 = vadd.f32 %v5367_v60, %v5314_v2 }
 0x15e   : > { %v3656_v24 = vpop.f32.mrb[32].mxu1  ;;  %v3572_v9 = vpop.f32.mrb[35].mxu0 }
 0x15f   : > { %v3657_v19 = vpop.f32.mrb[33].mxu1  ;;  %v3573_v17 = vadd.f32 %v3572_v9, %v3571_v58  ;;  %v2126_v9 = vadd.f32 %v5383_v34, %v5314_v2 }
 0x160   : > { %v3658_v38 = vadd.f32 %v3657_v19, %v3656_v24  ;;  %v3659_v8 = vpop.f32.mrb[34].mxu1  ;;  %4021 = vmatmul.mubr.bf16.gmra.mrb[140].mxu0 %v3399_v5 }
 0x161   : > { %v3660_v48 = vpop.f32.mrb[35].mxu1 }
 0x162   : > { %v5408_v20 = vadd.f32 %v3658_v38, %v2102_v47  ;;  %v3661_v35 = vadd.f32 %v3660_v48, %v3659_v8 }
 0x163   : > { %2671 = vmatmul.mubr.bf16.gmra.mrb[140].mxu1 %v3396_v0  ;;  %v3574_v30 = vpop.f32.mrb[36].mxu0 }
 0x164   : > { %v5410_v14 = vadd.f32 %v3661_v35, %v2105_v49  ;;  %v3575_v61 = vpop.f32.mrb[37].mxu0 }
 0x165   : > { %v5414_v42 = vadd.f32 %v3575_v61, %v3574_v30  ;;  %v3577_v36 = vpop.f32.mrb[38].mxu0  ;;  %v2129_v61 = vadd.f32 %v5389_v12, %v5314_v2  ;;  %v2137_v12 = vadd.f32 %v3573_v17, %v5314_v2 }
 0x166   : > { %v3662_v53 = vpop.f32.mrb[36].mxu1  ;;  %v3578_v29 = vpop.f32.mrb[39].mxu0 }
 0x167   : > { %v3663_v1 = vpop.f32.mrb[37].mxu1  ;;  %v3579_v50 = vadd.f32 %v3578_v29, %v3577_v36  ;;  %v2142_v17 = vadd.f32 %v5414_v42, %v5314_v2 }
 0x168   : > { %v3664_v39 = vadd.f32 %v3663_v1, %v3662_v53  ;;  %v3665_v59 = vpop.f32.mrb[38].mxu1 }
 0x169   : > { %v3666_v13 = vpop.f32.mrb[39].mxu1 }
 0x16a   : > { %v5418_v7 = vadd.f32 %v3664_v39, %v2110_v10  ;;  %v3667_v15 = vadd.f32 %v3666_v13, %v3665_v59 }
 0x16b   : > { %v3580_v51 = vpop.f32.mrb[40].mxu0 }
 0x16c   : > { %v5420_v43 = vadd.f32 %v3667_v15, %v2113_v32  ;;  %v3581_v45 = vpop.f32.mrb[41].mxu0  ;;  %v2134_v32 = vadd.f32 %v5404_v26, %v5314_v2 }
 0x16d   : > { %v5424_v28 = vadd.f32 %v3581_v45, %v3580_v51  ;;  %v3583_v56 = vpop.f32.mrb[42].mxu0 }
 0x16e   : > { %v3668_v4 = vpop.f32.mrb[40].mxu1  ;;  %v3584_v24 = vpop.f32.mrb[43].mxu0 }
 0x16f   : > { %v3669_v46 = vpop.f32.mrb[41].mxu1  ;;  %v5430_v0 = vadd.f32 %v3584_v24, %v3583_v56 }
 0x170   : > { %v3670_v23 = vadd.f32 %v3669_v46, %v3668_v4  ;;  %v3671_v40 = vpop.f32.mrb[42].mxu1 }
 0x171   : > { %v3672_v25 = vpop.f32.mrb[43].mxu1 }
 0x172   : > { %v5428_v19 = vadd.f32 %v3670_v23, %v2118_v21  ;;  %v3673_v5 = vadd.f32 %v3672_v25, %v3671_v40 }
 0x173   : > { %v3586_v38 = vpop.f32.mrb[44].mxu0 }
 0x174   : > { %v5432_v47 = vadd.f32 %v3673_v5, %v2121_v54  ;;  %v3587_v37 = vpop.f32.mrb[45].mxu0 }
 0x175   : > { %v5436_v48 = vadd.f32 %v3587_v37, %v3586_v38  ;;  %v3589_v35 = vpop.f32.mrb[46].mxu0 }
 0x176   : > { %v3674_v58 = vpop.f32.mrb[44].mxu1  ;;  %v3590_v60 = vpop.f32.mrb[47].mxu0 }
 0x177   : > { %v3675_v8 = vpop.f32.mrb[45].mxu1  ;;  %v5442_v10 = vadd.f32 %v3590_v60, %v3589_v35 }
 0x178   : > { %v3676_v49 = vadd.f32 %v3675_v8, %v3674_v58  ;;  %v3677_v30 = vpop.f32.mrb[46].mxu1 }
 0x179   : > { %v3678_v53 = vpop.f32.mrb[47].mxu1 }
 0x17a   : > { %v5440_v1 = vadd.f32 %v3676_v49, %v2126_v9  ;;  %v3679_v39 = vadd.f32 %v3678_v53, %v3677_v30 }
 0x17b   : > { %v3744_v29 = vpop.f32.mrb[48].mxu0 }
 0x17c   : > { %v5444_v36 = vadd.f32 %v3679_v39, %v2129_v61  ;;  %v3745_v13 = vpop.f32.mrb[49].mxu0 }
 0x17d   : > { %v3746_v51 = vadd.f32 %v3745_v13, %v3744_v29  ;;  %v3747_v45 = vpop.f32.mrb[50].mxu0 }
 0x17e   : > { %v3680_v59 = vpop.f32.mrb[48].mxu1  ;;  %v3748_v21 = vpop.f32.mrb[51].mxu0 }
 0x17f   : > { %v3681_v34 = vpop.f32.mrb[49].mxu1  ;;  %v5452_v56 = vadd.f32 %v3746_v51, %v5322_v33  ;;  %v3749_v24 = vadd.f32 %v3748_v21, %v3747_v45  ;;  %v2145_v33 = vadd.f32 %v3579_v50, %v5314_v2  ;;  %v2150_v50 = vadd.f32 %v5424_v28, %v5314_v2 }
 0x180   : > { %v3682_v15 = vadd.f32 %v3681_v34, %v3680_v59  ;;  %v3683_v4 = vpop.f32.mrb[50].mxu1 }
 0x181   : > { %v3684_v46 = vpop.f32.mrb[51].mxu1  ;;  %v5457_v54 = vadd.f32 %v3749_v24, %v5334_v27 }
 0x182   : > { %v5449_v23 = vadd.f32 %v3682_v15, %v2134_v32  ;;  %v3685_v40 = vadd.f32 %v3684_v46, %v3683_v4 }
 0x183   : > { %v3750_v5 = vpop.f32.mrb[52].mxu0 }
 0x184   : > { %v5454_v25 = vadd.f32 %v3685_v40, %v2137_v12  ;;  %v3751_v58 = vpop.f32.mrb[53].mxu0 }
 0x185   : > { %v3752_v8 = vadd.f32 %v3751_v58, %v3750_v5  ;;  %v3753_v49 = vpop.f32.mrb[54].mxu0 }
 0x186   : > { %v3686_v26 = vpop.f32.mrb[52].mxu1  ;;  %v3754_v30 = vpop.f32.mrb[55].mxu0 }
 0x187   : > { %v3687_v38 = vpop.f32.mrb[53].mxu1  ;;  %v5465_v27 = vadd.f32 %v3752_v8, %v5348_v3  ;;  %v3755_v61 = vadd.f32 %v3754_v30, %v3753_v49  ;;  %v2153_v3 = vadd.f32 %v5430_v0, %v5314_v2  ;;  %v2158_v0 = vadd.f32 %v5436_v48, %v5314_v2 }
 0x188   : > { %v3688_v37 = vadd.f32 %v3687_v38, %v3686_v26  ;;  %v3689_v9 = vpop.f32.mrb[54].mxu1 }
 0x189   : > { %v3690_v35 = vpop.f32.mrb[55].mxu1  ;;  %v5470_v59 = vadd.f32 %v3755_v61, %v5355_v22 }
 0x18a   : > { %v5462_v60 = vadd.f32 %v3688_v37, %v2142_v17  ;;  %v3691_v53 = vadd.f32 %v3690_v35, %v3689_v9 }
 0x18b   : > { %v3756_v29 = vpop.f32.mrb[56].mxu0 }
 0x18c   : > { %v5467_v39 = vadd.f32 %v3691_v53, %v2145_v33  ;;  %v3757_v13 = vpop.f32.mrb[57].mxu0 }
 0x18d   : > { %v3758_v15 = vadd.f32 %v3757_v13, %v3756_v29  ;;  %v3759_v4 = vpop.f32.mrb[58].mxu0 }
 0x18e   : > { %v3692_v42 = vpop.f32.mrb[56].mxu1  ;;  %v3760_v12 = vpop.f32.mrb[59].mxu0 }
 0x18f   : > { %v3693_v34 = vpop.f32.mrb[57].mxu1  ;;  %v5479_v22 = vadd.f32 %v3758_v15, %v5365_v11  ;;  %v3761_v40 = vadd.f32 %v3760_v12, %v3759_v4  ;;  %v2161_v11 = vadd.f32 %v5442_v10, %v5314_v2  ;;  %v2166_v10 = vadd.f32 %v5255_v6, %v5314_v2 }
 0x190   : > { %v3694_v32 = vadd.f32 %v3693_v34, %v3692_v42  ;;  %v3695_v51 = vpop.f32.mrb[58].mxu1 }
 0x191   : > { %v3696_v45 = vpop.f32.mrb[59].mxu1  ;;  %v5484_v28 = vadd.f32 %v3761_v40, %v5372_v16 }
 0x192   : > { %v5476_v46 = vadd.f32 %v3694_v32, %v2150_v50  ;;  %v3697_v21 = vadd.f32 %v3696_v45, %v3695_v51 }
 0x193   : > { %v3762_v5 = vpop.f32.mrb[60].mxu0 }
 0x194   : > { %v5481_v24 = vadd.f32 %v3697_v21, %v2153_v3  ;;  %v3763_v58 = vpop.f32.mrb[61].mxu0 }
 0x195   : > { %v3764_v37 = vadd.f32 %v3763_v58, %v3762_v5  ;;  %v3765_v9 = vpop.f32.mrb[62].mxu0 }
 0x196   : > { %v3698_v26 = vpop.f32.mrb[60].mxu1  ;;  %v3766_v33 = vpop.f32.mrb[63].mxu0 }
 0x197   : > { %v3699_v38 = vpop.f32.mrb[61].mxu1  ;;  %v5493_v16 = vadd.f32 %v3764_v37, %v5387_v62  ;;  %v3767_v53 = vadd.f32 %v3766_v33, %v3765_v9  ;;  %v2169_v62 = vadd.f32 %v5259_v44, %v5314_v2  ;;  %v2174_v44 = vadd.f32 %v5277_v55, %v5314_v2 }
 0x198   : > { %v3700_v17 = vadd.f32 %v3699_v38, %v3698_v26  ;;  %v3701_v8 = vpop.f32.mrb[62].mxu1 }
 0x199   : > { %v3702_v49 = vpop.f32.mrb[63].mxu1  ;;  %v5498_v48 = vadd.f32 %v3767_v53, %v5393_v57 }
 0x19a   : > { %v5490_v35 = vadd.f32 %v3700_v17, %v2158_v0  ;;  %v3703_v30 = vadd.f32 %v3702_v49, %v3701_v8 }
 0x19b   : > { %v3768_v29 = vpop.f32.mrb[64].mxu0 }
 0x19c   : > { %v5495_v61 = vadd.f32 %v3703_v30, %v2161_v11  ;;  %v3769_v13 = vpop.f32.mrb[65].mxu0 }
 0x19d   : > { %v3770_v32 = vadd.f32 %v3769_v13, %v3768_v29  ;;  %v3771_v51 = vpop.f32.mrb[66].mxu0 }
 0x19e   : > { %v3704_v42 = vpop.f32.mrb[64].mxu1  ;;  %v3772_v3 = vpop.f32.mrb[67].mxu0 }
 0x19f   : > { %v3705_v34 = vpop.f32.mrb[65].mxu1  ;;  %v5507_v57 = vadd.f32 %v3770_v32, %v5408_v20  ;;  %v3773_v21 = vadd.f32 %v3772_v3, %v3771_v51  ;;  %v2177_v20 = vadd.f32 %v5281_v63, %v5314_v2  ;;  %v2182_v63 = vadd.f32 %v5291_v31, %v5314_v2 }
 0x1a0   : > { %v3706_v50 = vadd.f32 %v3705_v34, %v3704_v42  ;;  %v3707_v15 = vpop.f32.mrb[66].mxu1 }
 0x1a1   : > { %v3708_v4 = vpop.f32.mrb[67].mxu1  ;;  %v5512_v6 = vadd.f32 %v3773_v21, %v5410_v14 }
 0x1a2   : > { %v5504_v45 = vadd.f32 %v3706_v50, %v2166_v10  ;;  %v3709_v12 = vadd.f32 %v3708_v4, %v3707_v15 }
 0x1a3   : > { %v3774_v5 = vpop.f32.mrb[68].mxu0 }
 0x1a4   : > { %v5509_v40 = vadd.f32 %v3709_v12, %v2169_v62  ;;  %v3775_v58 = vpop.f32.mrb[69].mxu0 }
 0x1a5   : > { %v3776_v17 = vadd.f32 %v3775_v58, %v3774_v5  ;;  %v3777_v8 = vpop.f32.mrb[70].mxu0 }
 0x1a6   : > { %v3710_v26 = vpop.f32.mrb[68].mxu1  ;;  %v3778_v11 = vpop.f32.mrb[71].mxu0 }
 0x1a7   : > { %v3711_v38 = vpop.f32.mrb[69].mxu1  ;;  %v5521_v14 = vadd.f32 %v3776_v17, %v5418_v7  ;;  %v3779_v30 = vadd.f32 %v3778_v11, %v3777_v8  ;;  %v2185_v7 = vadd.f32 %v5293_v18, %v5314_v2  ;;  %v2190_v18 = vadd.f32 %v5303_v52, %v5314_v2 }
 0x1a8   : > { %v3712_v0 = vadd.f32 %v3711_v38, %v3710_v26  ;;  %v3713_v37 = vpop.f32.mrb[70].mxu1 }
 0x1a9   : > { %v3714_v9 = vpop.f32.mrb[71].mxu1  ;;  %v5526_v55 = vadd.f32 %v3779_v30, %v5420_v43 }
 0x1aa   : > { %v5518_v49 = vadd.f32 %v3712_v0, %v2174_v44  ;;  %v3715_v33 = vadd.f32 %v3714_v9, %v3713_v37 }
 0x1ab   : > { %v3780_v29 = vpop.f32.mrb[72].mxu0 }
 0x1ac   : > { %v5523_v53 = vadd.f32 %v3715_v33, %v2177_v20  ;;  %v3781_v13 = vpop.f32.mrb[73].mxu0 }
 0x1ad   : > { %v3782_v50 = vadd.f32 %v3781_v13, %v3780_v29  ;;  %v3783_v15 = vpop.f32.mrb[74].mxu0 }
 0x1ae   : > { %v3716_v42 = vpop.f32.mrb[72].mxu1  ;;  %v3784_v62 = vpop.f32.mrb[75].mxu0 }
 0x1af   : > { %v3717_v34 = vpop.f32.mrb[73].mxu1  ;;  %v5535_v43 = vadd.f32 %v3782_v50, %v5428_v19  ;;  %v3785_v12 = vadd.f32 %v3784_v62, %v3783_v15  ;;  %v2193_v19 = vadd.f32 %v5305_v41, %v5314_v2 }
 0x1b0   : > { %v3718_v10 = vadd.f32 %v3717_v34, %v3716_v42  ;;  %v3719_v32 = vpop.f32.mrb[74].mxu1 }
 0x1b1   : > { %v3720_v51 = vpop.f32.mrb[75].mxu1  ;;  %v5540_v31 = vadd.f32 %v3785_v12, %v5432_v47 }
 0x1b2   : > { %v5532_v4 = vadd.f32 %v3718_v10, %v2182_v63  ;;  %v3721_v3 = vadd.f32 %v3720_v51, %v3719_v32 }
 0x1b3   : > { %v3786_v5 = vpop.f32.mrb[76].mxu0 }
 0x1b4   : > { %v5537_v21 = vadd.f32 %v3721_v3, %v2185_v7  ;;  %v3787_v58 = vpop.f32.mrb[77].mxu0 }
 0x1b5   : > { %v3788_v0 = vadd.f32 %v3787_v58, %v3786_v5  ;;  %v3789_v37 = vpop.f32.mrb[78].mxu0 }
 0x1b6   : > { %v3722_v26 = vpop.f32.mrb[76].mxu1  ;;  %v3790_v20 = vpop.f32.mrb[79].mxu0 }
 0x1b7   : > { %v3723_v38 = vpop.f32.mrb[77].mxu1  ;;  %v5549_v47 = vadd.f32 %v3788_v0, %v5440_v1  ;;  %v3791_v33 = vadd.f32 %v3790_v20, %v3789_v37 }
 0x1b8   : > { %v3724_v44 = vadd.f32 %v3723_v38, %v3722_v26  ;;  %v3725_v17 = vpop.f32.mrb[78].mxu1 }
 0x1b9   : > { %v3726_v8 = vpop.f32.mrb[79].mxu1  ;;  %v5554_v52 = vadd.f32 %v3791_v33, %v5444_v36 }
 0x1ba   : > { %v5546_v9 = vadd.f32 %v3724_v44, %v2190_v18  ;;  %v3727_v11 = vadd.f32 %v3726_v8, %v3725_v17 }
 0x1bb   : > { %v3792_v42 = vpop.f32.mrb[80].mxu0 }
 0x1bc   : > { %v5551_v30 = vadd.f32 %v3727_v11, %v2193_v19  ;;  %v3793_v34 = vpop.f32.mrb[81].mxu0 }
 0x1bd   : > { %v3794_v63 = vadd.f32 %v3793_v34, %v3792_v42  ;;  %v3795_v2 = vpop.f32.mrb[82].mxu0 }
 0x1be   : > { %v3856_v29 = vpop.f32.mrb[80].mxu1  ;;  %v3796_v50 = vpop.f32.mrb[83].mxu0 }
 0x1bf   : > { %v3857_v13 = vpop.f32.mrb[81].mxu1  ;;  %v5557_v1 = vadd.f32 %v3794_v63, %v5449_v23  ;;  %v3797_v15 = vadd.f32 %v3796_v50, %v3795_v2 }
 0x1c0   : > { %v3858_v41 = vadd.f32 %v3857_v13, %v3856_v29  ;;  %v3859_v10 = vpop.f32.mrb[82].mxu1 }
 0x1c1   : > { %v3860_v32 = vpop.f32.mrb[83].mxu1  ;;  %v5563_v36 = vadd.f32 %v3797_v15, %v5454_v25 }
 0x1c2   : > { %v3861_v7 = vadd.f32 %v3860_v32, %v3859_v10  ;;  %v5560_v51 = vadd.f32 %v3858_v41, %v5452_v56 }
 0x1c3   : > { %v3798_v3 = vpop.f32.mrb[84].mxu0 }
 0x1c4   : > { %v5566_v62 = vadd.f32 %v3861_v7, %v5457_v54  ;;  %v3799_v26 = vpop.f32.mrb[85].mxu0 }
 0x1c5   : > { %v3800_v38 = vadd.f32 %v3799_v26, %v3798_v3  ;;  %v3801_v18 = vpop.f32.mrb[86].mxu0 }
 0x1c6   : > { %v3862_v12 = vpop.f32.mrb[84].mxu1  ;;  %v3802_v44 = vpop.f32.mrb[87].mxu0 }
 0x1c7   : > { %v3863_v5 = vpop.f32.mrb[85].mxu1  ;;  %v5569_v17 = vadd.f32 %v3800_v38, %v5462_v60  ;;  %v3803_v56 = vadd.f32 %v3802_v44, %v3801_v18 }
 0x1c8   : > { %v3864_v58 = vadd.f32 %v3863_v5, %v3862_v12  ;;  %v3865_v23 = vpop.f32.mrb[86].mxu1 }
 0x1c9   : > { %v3866_v0 = vpop.f32.mrb[87].mxu1  ;;  %v5575_v54 = vadd.f32 %v3803_v56, %v5467_v39 }
 0x1ca   : > { %v3867_v37 = vadd.f32 %v3866_v0, %v3865_v23  ;;  %v5572_v25 = vadd.f32 %v3864_v58, %v5465_v27 }
 0x1cb   : > { %v3804_v8 = vpop.f32.mrb[88].mxu0 }
 0x1cc   : > { %v5578_v19 = vadd.f32 %v3867_v37, %v5470_v59  ;;  %v3805_v11 = vpop.f32.mrb[89].mxu0 }
 0x1cd   : > { %v3806_v42 = vadd.f32 %v3805_v11, %v3804_v8  ;;  %v3807_v34 = vpop.f32.mrb[90].mxu0 }
 0x1ce   : > { %v3868_v20 = vpop.f32.mrb[88].mxu1  ;;  %v3808_v13 = vpop.f32.mrb[91].mxu0 }
 0x1cf   : > { %v3869_v33 = vpop.f32.mrb[89].mxu1  ;;  %v5581_v41 = vadd.f32 %v3806_v42, %v5476_v46  ;;  %v3809_v27 = vadd.f32 %v3808_v13, %v3807_v34 }
 0x1d0   : > { %v3870_v29 = vadd.f32 %v3869_v33, %v3868_v20  ;;  %v3871_v60 = vpop.f32.mrb[90].mxu1 }
 0x1d1   : > { %v3872_v63 = vpop.f32.mrb[91].mxu1  ;;  %v5587_v59 = vadd.f32 %v3809_v27, %v5481_v24 }
 0x1d2   : > { %v3873_v2 = vadd.f32 %v3872_v63, %v3871_v60  ;;  %v5584_v39 = vadd.f32 %v3870_v29, %v5479_v22 }
 0x1d3   : > { %v3810_v50 = vpop.f32.mrb[92].mxu0 }
 0x1d4   : > { %v5590_v10 = vadd.f32 %v3873_v2, %v5484_v28  ;;  %v3811_v15 = vpop.f32.mrb[93].mxu0 }
 0x1d5   : > { %v3812_v3 = vadd.f32 %v3811_v15, %v3810_v50  ;;  %v3813_v26 = vpop.f32.mrb[94].mxu0 }
 0x1d6   : > { %v3874_v32 = vpop.f32.mrb[92].mxu1  ;;  %v3814_v5 = vpop.f32.mrb[95].mxu0 }
 0x1d7   : > { %v3875_v7 = vpop.f32.mrb[93].mxu1  ;;  %v5593_v58 = vadd.f32 %v3812_v3, %v5490_v35  ;;  %v3815_v22 = vadd.f32 %v3814_v5, %v3813_v26 }
 0x1d8   : > { %v3876_v12 = vadd.f32 %v3875_v7, %v3874_v32  ;;  %v3877_v46 = vpop.f32.mrb[94].mxu1 }
 0x1d9   : > { %v3878_v38 = vpop.f32.mrb[95].mxu1  ;;  %v5599_v28 = vadd.f32 %v3815_v22, %v5495_v61 }
 0x1da   : > { %v3879_v18 = vadd.f32 %v3878_v38, %v3877_v46  ;;  %v5596_v24 = vadd.f32 %v3876_v12, %v5493_v16 }
 0x1db   : > { %v3816_v44 = vpop.f32.mrb[96].mxu0 }
 0x1dc   : > { %v5602_v23 = vadd.f32 %v3879_v18, %v5498_v48  ;;  %v3817_v56 = vpop.f32.mrb[97].mxu0 }
 0x1dd   : > { %v3818_v8 = vadd.f32 %v3817_v56, %v3816_v44  ;;  %v3819_v11 = vpop.f32.mrb[98].mxu0 }
 0x1de   : > { %v3880_v0 = vpop.f32.mrb[96].mxu1  ;;  %v3820_v33 = vpop.f32.mrb[99].mxu0 }
 0x1df   : > { %v3881_v37 = vpop.f32.mrb[97].mxu1  ;;  %v5605_v29 = vadd.f32 %v3818_v8, %v5504_v45  ;;  %v3821_v16 = vadd.f32 %v3820_v33, %v3819_v11 }
 0x1e0   : > { %v3882_v20 = vadd.f32 %v3881_v37, %v3880_v0  ;;  %v3883_v35 = vpop.f32.mrb[98].mxu1 }
 0x1e1   : > { %v3884_v42 = vpop.f32.mrb[99].mxu1  ;;  %v5611_v48 = vadd.f32 %v3821_v16, %v5509_v40 }
 0x1e2   : > { %v3885_v34 = vadd.f32 %v3884_v42, %v3883_v35  ;;  %v5608_v61 = vadd.f32 %v3882_v20, %v5507_v57 }
 0x1e3   : > { %v3822_v13 = vpop.f32.mrb[100].mxu0 }
 0x1e4   : > { %v5614_v60 = vadd.f32 %v3885_v34, %v5512_v6  ;;  %v3823_v27 = vpop.f32.mrb[101].mxu0 }
 0x1e5   : > { %v3824_v50 = vadd.f32 %v3823_v27, %v3822_v13  ;;  %v3825_v15 = vpop.f32.mrb[102].mxu0 }
 0x1e6   : > { %v3886_v63 = vpop.f32.mrb[100].mxu1  ;;  %v3826_v7 = vpop.f32.mrb[103].mxu0 }
 0x1e7   : > { %v3887_v2 = vpop.f32.mrb[101].mxu1  ;;  %v5617_v12 = vadd.f32 %v3824_v50, %v5518_v49  ;;  %v3827_v57 = vadd.f32 %v3826_v7, %v3825_v15 }
 0x1e8   : > { %v3888_v32 = vadd.f32 %v3887_v2, %v3886_v63  ;;  %v3889_v45 = vpop.f32.mrb[102].mxu1 }
 0x1e9   : > { %v3890_v3 = vpop.f32.mrb[103].mxu1  ;;  %v5623_v6 = vadd.f32 %v3827_v57, %v5523_v53 }
 0x1ea   : > { %v3891_v26 = vadd.f32 %v3890_v3, %v3889_v45  ;;  %v5620_v40 = vadd.f32 %v3888_v32, %v5521_v14 }
 0x1eb   : > { %v3828_v5 = vpop.f32.mrb[104].mxu0 }
 0x1ec   : > { %v5626_v46 = vadd.f32 %v3891_v26, %v5526_v55  ;;  %v3829_v22 = vpop.f32.mrb[105].mxu0 }
 0x1ed   : > { %v3830_v44 = vadd.f32 %v3829_v22, %v3828_v5  ;;  %v3831_v56 = vpop.f32.mrb[106].mxu0 }
 0x1ee   : > { %v3892_v38 = vpop.f32.mrb[104].mxu1  ;;  %v3832_v37 = vpop.f32.mrb[107].mxu0 }
 0x1ef   : > { %v3893_v18 = vpop.f32.mrb[105].mxu1  ;;  %v5629_v20 = vadd.f32 %v3830_v44, %v5532_v4  ;;  %v3833_v14 = vadd.f32 %v3832_v37, %v3831_v56 }
 0x1f0   : > { %v3894_v0 = vadd.f32 %v3893_v18, %v3892_v38  ;;  %v3895_v49 = vpop.f32.mrb[106].mxu1 }
 0x1f1   : > { %v3896_v8 = vpop.f32.mrb[107].mxu1  ;;  %v5635_v55 = vadd.f32 %v3833_v14, %v5537_v21 }
 0x1f2   : > { %v3897_v11 = vadd.f32 %v3896_v8, %v3895_v49  ;;  %v5632_v53 = vadd.f32 %v3894_v0, %v5535_v43 }
 0x1f3   : > { %v3834_v33 = vpop.f32.mrb[108].mxu0 }
 0x1f4   : > { %v5638_v35 = vadd.f32 %v3897_v11, %v5540_v31  ;;  %v3835_v16 = vpop.f32.mrb[109].mxu0 }
 0x1f5   : > { %v3836_v13 = vadd.f32 %v3835_v16, %v3834_v33  ;;  %v3837_v27 = vpop.f32.mrb[110].mxu0 }
 0x1f6   : > { %v3898_v42 = vpop.f32.mrb[108].mxu1  ;;  %v3838_v2 = vpop.f32.mrb[111].mxu0 }
 0x1f7   : > { %v3899_v34 = vpop.f32.mrb[109].mxu1  ;;  %v5641_v32 = vadd.f32 %v3836_v13, %v5546_v9  ;;  %v3839_v43 = vadd.f32 %v3838_v2, %v3837_v27 }
 0x1f8   : > { %v3900_v63 = vadd.f32 %v3899_v34, %v3898_v42  ;;  %v3901_v4 = vpop.f32.mrb[110].mxu1 }
 0x1f9   : > { %v3902_v50 = vpop.f32.mrb[111].mxu1  ;;  %v5645_v31 = vadd.f32 %v3839_v43, %v5551_v30 }
 0x1fa   : > { %v3903_v15 = vadd.f32 %v3902_v50, %v3901_v4  ;;  %v2609_v21 = vadd.f32 %v3900_v63, %v5549_v47 }
 0x1fb   : > { %v3994_v3 = vpop.f32.mrb[112].mxu0 }
 0x1fc   : > { %v5648_v45 = vadd.f32 %v3903_v15, %v5554_v52  ;;  %v2722_v57 = vadd.f32 %v3994_v3, %v5572_v25  ;;  %v2713_v5 = vpop.f32.mrb[113].mxu0 }
 0x1fd   : > { %v3995_v9 = vpop.f32.mrb[114].mxu0  ;;  %v2714_v18 = vadd.f32 %v2713_v5, %v5560_v51 }
 0x1fe   : > { %v3904_v7 = vpop.f32.mrb[112].mxu1  ;;  %v2725_v44 = vadd.f32 %v3995_v9, %v5578_v19  ;;  %v2716_v0 = vpop.f32.mrb[115].mxu0 }
 0x1ff   : > { %v3905_v26 = vpop.f32.mrb[113].mxu1  ;;  %v2717_v56 = vadd.f32 %v2716_v0, %v5566_v62  ;;  %2864 = vxpose.xlu0.b32.start [1/16] %v2714_v18, 128 }
 0x200   : > { %v3906_v38 = vadd.f32 %v3905_v26, %v3904_v7  ;;  %v3907_v22 = vpop.f32.mrb[114].mxu1 }
 0x201   : > { %v3908_v47 = vpop.f32.mrb[115].mxu1 }
 0x202   : > { %v3909_v30 = vadd.f32 %v3908_v47, %v3907_v22  ;;  %v5655_v52 = vadd.f32 %v3906_v38, %v5557_v1 }
 0x203   : > { %v3998_v37 = vpop.f32.mrb[116].mxu0  ;;  %2865 = vxpose.xlu0.b32.cont [2/16] %v2717_v56, 128 }
 0x204   : > { %v5658_v25 = vadd.f32 %v3909_v30, %v5563_v36  ;;  %v2738_v8 = vadd.f32 %v3998_v37, %v5596_v24  ;;  %v2729_v14 = vpop.f32.mrb[117].mxu0 }
 0x205   : > { %v2730_v11 = vadd.f32 %v2729_v14, %v5584_v39  ;;  %v3999_v42 = vpop.f32.mrb[118].mxu0 }
 0x206   : > { %v3910_v49 = vpop.f32.mrb[116].mxu1  ;;  %v2741_v62 = vadd.f32 %v3999_v42, %v5602_v23  ;;  %v2732_v1 = vpop.f32.mrb[119].mxu0 }
 0x207   : > { %v3911_v51 = vpop.f32.mrb[117].mxu1  ;;  %v2733_v36 = vadd.f32 %v2732_v1, %v5590_v10  ;;  %2866 = vxpose.xlu0.b32.cont [3/16] %v2722_v57, 128 }
 0x208   : > { %v3912_v19 = vadd.f32 %v3911_v51, %v3910_v49  ;;  %v3913_v33 = vpop.f32.mrb[118].mxu1 }
 0x209   : > { %v3914_v16 = vpop.f32.mrb[119].mxu1 }
 0x20a   : > { %v3915_v34 = vadd.f32 %v3914_v16, %v3913_v33  ;;  %v2625_v13 = vadd.f32 %v3912_v19, %v5569_v17 }
 0x20b   : > { %v4002_v27 = vpop.f32.mrb[120].mxu0  ;;  %2867 = vxpose.xlu0.b32.cont [4/16] %v2725_v44, 128 }
 0x20c   : > { %v2628_v63 = vadd.f32 %v3915_v34, %v5575_v54  ;;  %v5667_v4 = vadd.f32 %v4002_v27, %v5620_v40  ;;  %v2745_v2 = vpop.f32.mrb[121].mxu0 }
 0x20d   : > { %v2746_v23 = vadd.f32 %v2745_v2, %v5608_v61  ;;  %v4003_v15 = vpop.f32.mrb[122].mxu0 }
 0x20e   : > { %v3916_v24 = vpop.f32.mrb[120].mxu1  ;;  %v5671_v10 = vadd.f32 %v4003_v15, %v5626_v46  ;;  %v2748_v17 = vpop.f32.mrb[123].mxu0 }
 0x20f   : > { %v3917_v39 = vpop.f32.mrb[121].mxu1  ;;  %v2749_v54 = vadd.f32 %v2748_v17, %v5614_v60  ;;  %2868 = vxpose.xlu0.b32.cont [5/16] %v2730_v11, 128 }
 0x210   : > { %v3918_v50 = vadd.f32 %v3917_v39, %v3916_v24  ;;  %v3919_v43 = vpop.f32.mrb[122].mxu1 }
 0x211   : > { %v3920_v7 = vpop.f32.mrb[123].mxu1 }
 0x212   : > { %v3921_v3 = vadd.f32 %v3920_v7, %v3919_v43  ;;  %v2633_v57 = vadd.f32 %v3918_v50, %v5581_v41 }
 0x213   : > { %v4006_v5 = vpop.f32.mrb[124].mxu0  ;;  %2869 = vxpose.xlu0.b32.cont [6/16] %v2733_v36, 128 }
 0x214   : > { %v2636_v40 = vadd.f32 %v3921_v3, %v5587_v59  ;;  %v5676_v38 = vadd.f32 %v4006_v5, %v2609_v21  ;;  %v2761_v22 = vpop.f32.mrb[125].mxu0 }
 0x215   : > { %v5679_v46 = vadd.f32 %v2761_v22, %v5632_v53  ;;  %v4007_v44 = vpop.f32.mrb[126].mxu0 }
 0x216   : > { %v3922_v26 = vpop.f32.mrb[124].mxu1  ;;  %v5682_v60 = vadd.f32 %v4007_v44, %v5648_v45  ;;  %v2764_v41 = vpop.f32.mrb[127].mxu0 }
 0x217   : > { %v3923_v61 = vpop.f32.mrb[125].mxu1  ;;  %v5685_v59 = vadd.f32 %v2764_v41, %v5638_v35  ;;  %2870 = vxpose.xlu0.b32.cont [7/16] %v2738_v8, 128 }
 0x218   : > { %v3924_v9 = vadd.f32 %v3923_v61, %v3922_v26  ;;  %v3925_v18 = vpop.f32.mrb[126].mxu1 }
 0x219   : > { %v3926_v47 = vpop.f32.mrb[127].mxu1 }
 0x21a   : > { %v3927_v0 = vadd.f32 %v3926_v47, %v3925_v18  ;;  %v2641_v21 = vadd.f32 %v3924_v9, %v5593_v58 }
 0x21b   : > { %v4010_v49 = vpop.f32.mrb[128].mxu0  ;;  %2871 = vxpose.xlu0.b32.cont [8/16] %v2741_v62, 128 }
 0x21c   : > { %v2644_v30 = vadd.f32 %v3927_v0, %v5599_v28  ;;  %v2786_v53 = vadd.f32 %v4010_v49, %v2625_v13  ;;  %v2777_v51 = vpop.f32.mrb[129].mxu0 }
 0x21d   : > { %v4011_v19 = vpop.f32.mrb[130].mxu0  ;;  %v2778_v11 = vadd.f32 %v2777_v51, %v5655_v52  ;;  %v2842_v51 = vld [vmem:[%s5890_s3 + $0x10] sm:$0xff] }
 0x21e   : > { %v3928_v56 = vpop.f32.mrb[128].mxu1  ;;  %v2789_v33 = vadd.f32 %v4011_v19, %v2628_v63  ;;  %v2780_v35 = vpop.f32.mrb[131].mxu0 }
 0x21f   : > { %v3929_v37 = vpop.f32.mrb[129].mxu1  ;;  %v2781_v8 = vadd.f32 %v2780_v35, %v5658_v25  ;;  %2896 = vxpose.xlu1.b32.start [1/16] %v2778_v11, 128  ;;  %2872 = vxpose.xlu0.b32.cont [9/16] %v2746_v23, 128  ;;  %v5728_v35 = vld [vmem:[%s5711_s20 + $0x20] sm:$0xff] }
 0x220   : > { %v3930_v14 = vadd.f32 %v3929_v37, %v3928_v56  ;;  %v3931_v45 = vpop.f32.mrb[130].mxu1 }
 0x221   : > { %v3932_v42 = vpop.f32.mrb[131].mxu1 }
 0x222   : > { %v3933_v16 = vadd.f32 %v3932_v42, %v3931_v45  ;;  %v2649_v58 = vadd.f32 %v3930_v14, %v5605_v29  ;;  %v5721_v45 = vld [vmem:[%s5711_s20 + $0x10] sm:$0xff] }
 0x223   : > { %v4014_v1 = vpop.f32.mrb[132].mxu0  ;;  %2897 = vxpose.xlu1.b32.cont [2/16] %v2781_v8, 128  ;;  %2873 = vxpose.xlu0.b32.cont [10/16] %v2749_v54, 128  ;;  %v2938_v11 = vmul.f32 %v5721_v45, %v2842_v51 }
 0x224   : > { %v2652_v28 = vadd.f32 %v3933_v16, %v5611_v48  ;;  %v2802_v34 = vadd.f32 %v4014_v1, %v2641_v21  ;;  %v2793_v13 = vpop.f32.mrb[133].mxu0  ;;  %v2848_v16 = vld [vmem:[%s5890_s3 + $0x40] sm:$0xff] }
 0x225   : > { %v2794_v63 = vadd.f32 %v2793_v13, %v2633_v57  ;;  %v4015_v27 = vpop.f32.mrb[134].mxu0  ;;  %v2850_v13 = vld [vmem:[%s5890_s3 + $0x50] sm:$0xff] }
 0x226   : > { %v3934_v62 = vpop.f32.mrb[132].mxu1  ;;  %v2805_v39 = vadd.f32 %v4015_v27, %v2644_v30  ;;  %v2796_v25 = vpop.f32.mrb[135].mxu0 }
 0x227   : > { %v3935_v36 = vpop.f32.mrb[133].mxu1  ;;  %v2797_v23 = vadd.f32 %v2796_v25, %v2636_v40  ;;  %2898 = vxpose.xlu1.b32.cont [3/16] %v2786_v53, 128  ;;  %2874 = vxpose.xlu0.b32.cont [11/16] %v5667_v4, 128  ;;  %v2852_v25 = vld [vmem:[%s5890_s3 + $0x60] sm:$0xff] }
 0x228   : > { %v3936_v52 = vadd.f32 %v3935_v36, %v3934_v62  ;;  %v3937_v24 = vpop.f32.mrb[134].mxu1  ;;  %v2846_v62 = vld [vmem:[%s5890_s3 + $0x30] sm:$0xff] }
 0x229   : > { %v3938_v2 = vpop.f32.mrb[135].mxu1 }
 0x22a   : > { %v3939_v50 = vadd.f32 %v3938_v2, %v3937_v24  ;;  %v2657_v29 = vadd.f32 %v3936_v52, %v5617_v12  ;;  %v2946_v2 = vmul.f32 %v5721_v45, %v2850_v13 }
 0x22b   : > { %v4018_v15 = vpop.f32.mrb[136].mxu0  ;;  %2899 = vxpose.xlu1.b32.cont [4/16] %v2789_v33, 128  ;;  %2875 = vxpose.xlu0.b32.cont [12/16] %v5671_v10, 128  ;;  %v2844_v33 = vld [vmem:[%s5890_s3 + $0x20] sm:$0xff] }
 0x22c   : > { %v2660_v48 = vadd.f32 %v3939_v50, %v5623_v6  ;;  %v2818_v7 = vadd.f32 %v4018_v15, %v2657_v29  ;;  %v2809_v3 = vpop.f32.mrb[137].mxu0  ;;  %v2948_v15 = vmul.f32 %v5728_v35, %v2852_v25 }
 0x22d   : > { %v2810_v57 = vadd.f32 %v2809_v3, %v2649_v58  ;;  %v4019_v5 = vpop.f32.mrb[138].mxu0 }
 0x22e   : > { %v3940_v43 = vpop.f32.mrb[136].mxu1  ;;  %v2821_v40 = vadd.f32 %v4019_v5, %v2660_v48  ;;  %v2812_v22 = vpop.f32.mrb[139].mxu0 }
 0x22f   : > { %v3941_v17 = vpop.f32.mrb[137].mxu1  ;;  %v2813_v9 = vadd.f32 %v2812_v22, %v2652_v28  ;;  %2900 = vxpose.xlu1.b32.cont [5/16] %v2794_v63, 128  ;;  %2876 = vxpose.xlu0.b32.cont [13/16] %v5679_v46, 128  ;;  %v2940_v28 = vmul.f32 %v5728_v35, %v2844_v33 }
 0x230   : > { %v3942_v54 = vadd.f32 %v3941_v17, %v3940_v43  ;;  %v3943_v26 = vpop.f32.mrb[138].mxu1 }
 0x231   : > { %v3944_v61 = vpop.f32.mrb[139].mxu1 }
 0x232   : > { %v3945_v4 = vadd.f32 %v3944_v61, %v3943_v26  ;;  %v2665_v12 = vadd.f32 %v3942_v54, %v5629_v20  ;;  %v5758_v61 = vld [vmem:[%s5711_s20 + $0x8] sm:$0xff] }
 0x233   : > { %v4022_v18 = vpop.f32.mrb[140].mxu0  ;;  %2901 = vxpose.xlu1.b32.cont [6/16] %v2797_v23, 128  ;;  %2877 = vxpose.xlu0.b32.cont [14/16] %v5685_v59, 128 }
 0x234   : > { %v2668_v6 = vadd.f32 %v3945_v4, %v5635_v55  ;;  %v2825_v47 = vpop.f32.mrb[141].mxu0 }
 0x235   : > { %v2826_v0 = vadd.f32 %v2825_v47, %v2665_v12  ;;  %v4023_v30 = vpop.f32.mrb[142].mxu0 }
 0x236   : > { %v3946_v10 = vpop.f32.mrb[140].mxu1  ;;  %v2828_v49 = vpop.f32.mrb[143].mxu0 }
 0x237   : > { %v3947_v44 = vpop.f32.mrb[141].mxu1  ;;  %v2829_v37 = vadd.f32 %v2828_v49, %v2668_v6  ;;  %2902 = vxpose.xlu1.b32.cont [7/16] %v2802_v34, 128  ;;  %2878 = vxpose.xlu0.b32.cont [15/16] %v5676_v38, 128  ;;  %v5714_v38 = vld [vmem:[%s5711_s20] sm:$0xff]  ;;  %v5738_v34 = vld [vmem:[%s5711_s20 + $0x30] sm:$0xff] }
 0x238   : > { %v3948_v41 = vadd.f32 %v3947_v44, %v3946_v10  ;;  %v3949_v21 = vpop.f32.mrb[142].mxu1  ;;  %v2944_v36 = vmul.f32 %v5714_v38, %v2848_v16  ;;  %v2942_v24 = vmul.f32 %v5738_v34, %v2846_v62  ;;  %v5765_v44 = vld [vmem:[%s5711_s20 + $0x18] sm:$0xff] }
 0x239   : > { %v3950_v56 = vpop.f32.mrb[143].mxu1  ;;  %v2847_v16 = vld [vmem:[%s5890_s3 + $0x38] sm:$0xff] }
 0x23a   : > { %v2673_v53 = vadd.f32 %v3948_v41, %v5641_v32  ;;  %v3951_v46 = vadd.f32 %v3950_v56, %v3949_v21  ;;  %v2840_v32 = vld [vmem:[%s5890_s3] sm:$0xff] }
 0x23b   : > { %2903 = vxpose.xlu1.b32.cont [8/16] %v2805_v39, 128  ;;  %2879 = vxpose.xlu0.b32.end [16/16] %v5682_v60, 128  ;;  %v2936_v60 = vmul.f32 %v5714_v38, %v2840_v32 }
 0x23c   : > { %v2676_v20 = vadd.f32 %v3951_v46, %v5645_v31  ;;  %v2834_v55 = vadd.f32 %v4022_v18, %v2673_v53  ;;  %v2843_v18 = vld [vmem:[%s5890_s3 + $0x18] sm:$0xff] }
 0x23d   : > { %v2939_v46 = vmul.f32 %v5765_v44, %v2843_v18 }
 0x23e   : > { %v2837_v59 = vadd.f32 %v4023_v30, %v2676_v20  ;;  %v5772_v20 = vld [vmem:[%s5711_s20 + $0x28] sm:$0xff] }
 0x23f   : > { %2904 = vxpose.xlu1.b32.cont [9/16] %v2810_v57, 128 }
 0x243   : > { %2905 = vxpose.xlu1.b32.cont [10/16] %v2813_v9, 128 }
 0x247   : > { %2906 = vxpose.xlu1.b32.cont [11/16] %v2818_v7, 128  ;;  %v2854_v7 = vld [vmem:[%s5890_s3 + $0x70] sm:$0xff] }
 0x248   : > { %v2950_v5 = vmul.f32 %v5738_v34, %v2854_v7 }
 0x24b   : > { %2907 = vxpose.xlu1.b32.cont [12/16] %v2821_v40, 128  ;;  %v2841_v40 = vld [vmem:[%s5890_s3 + $0x8] sm:$0xff] }
 0x24c   : > { %v2937_v10 = vmul.f32 %v5758_v61, %v2841_v40 }
 0x24f   : > { %2908 = vxpose.xlu1.b32.cont [13/16] %v2826_v0, 128 }
 0x253   : > { %2909 = vxpose.xlu1.b32.cont [14/16] %v2829_v37, 128  ;;  %v2845_v37 = vld [vmem:[%s5890_s3 + $0x28] sm:$0xff] }
 0x257   : > { %2910 = vxpose.xlu1.b32.cont [15/16] %v2834_v55, 128 }
 0x25b   : > { %2911 = vxpose.xlu1.b32.end [16/16] %v2837_v59, 128 }
 0x27f   : > { %v2880_v31 = vpop.trf.xlu0 }
 0x280   : > { %v2952_v19 = vadd.f32 %v2936_v60, %v2880_v31 }
 0x282   : > { %v3473_v8 = vmul.f32 -1.442695, %v2952_v19 }
 0x283   : > { %v2881_v14 = vpop.trf.xlu0 }
 0x284   : > { %v2954_v58 = vadd.f32 %v2938_v11, %v2881_v14  ;;  %4155 = vpow2.f32 %v3473_v8  ;;  %v2941_v11 = vmul.f32 %v5772_v20, %v2845_v37  ;;  %v5779_v8 = vld [vmem:[%s5711_s20 + $0x38] sm:$0xff]  ;;  %s3326_s20 = sshll.u32 %s237_s12, 7  ;;  %s3503_s12 = sshll.u32 (%p4380_p5), %s4365_s21, 4 }
 0x285   : > { %s5797_s9 = scalar_lea.vmem [#allocation4], %s3326_s20  ;;  %s3201_s13 = scalar_lea.vmem (%p4380_p5), %s5892_s5, %s3503_s12 }
 0x286   : > { %v3475_v52 = vmul.f32 -1.442695, %v2954_v58 }
 0x287   : > { %v2882_v42 = vpop.trf.xlu0 }
 0x288   : > { %v2956_v63 = vadd.f32 %v2940_v28, %v2882_v42  ;;  %4157 = vpow2.f32 %v3475_v52  ;;  %v2943_v52 = vmul.f32 %v5779_v8, %v2847_v16  ;;  %v2860_v16 = vld [vmem:[%s5890_s3 + $0xa0] sm:$0xff] }
 0x28a   : > { %v3477_v50 = vmul.f32 -1.442695, %v2956_v63  ;;  %v2849_v63 = vld [vmem:[%s5890_s3 + $0x48] sm:$0xff] }
 0x28b   : > { %v2883_v1 = vpop.trf.xlu0 }
 0x28c   : > { %v2958_v23 = vadd.f32 %v2942_v24, %v2883_v1 }
 0x28e   : > { %v3479_v17 = vmul.f32 -1.442695, %v2958_v23  ;;  %v4156_v57 = vpop.eup %4155 }
 0x28f   : > { %v2884_v27 = vpop.trf.xlu0  ;;  %v3016_v4 = vadd.f32 1.0, %v4156_v57 }
 0x290   : > { %v2960_v39 = vadd.f32 %v2944_v36, %v2884_v27 }
 0x292   : > { %v3481_v29 = vmul.f32 -1.442695, %v2960_v39  ;;  %v4158_v12 = vpop.eup %4157 }
 0x293   : > { %v2885_v48 = vpop.trf.xlu0  ;;  %v3018_v0 = vadd.f32 1.0, %v4158_v12 }
 0x294   : > { %4159 = vpow2.f32 %v3481_v29  ;;  %v2962_v43 = vadd.f32 %v2946_v2, %v2885_v48  ;;  %v2945_v29 = vmul.f32 %v5758_v61, %v2849_v63 }
 0x295   : > { %4161 = vpow2.f32 %v3477_v50 }
 0x296   : > { %v3483_v3 = vmul.f32 -1.442695, %v2962_v43 }
 0x297   : > { %v2886_v54 = vpop.trf.xlu0 }
 0x298   : > { %4163 = vpow2.f32 %v3483_v3  ;;  %v2964_v26 = vadd.f32 %v2948_v15, %v2886_v54  ;;  %v2856_v54 = vld [vmem:[%s5890_s3 + $0x80] sm:$0xff] }
 0x299   : > { %4165 = vpow2.f32 %v3479_v17  ;;  %v2851_v17 = vld [vmem:[%s5890_s3 + $0x58] sm:$0xff] }
 0x29a   : > { %v3485_v22 = vmul.f32 -1.442695, %v2964_v26 }
 0x29b   : > { %v2887_v9 = vpop.trf.xlu0 }
 0x29c   : > { %4167 = vpow2.f32 %v3485_v22  ;;  %v2966_v6 = vadd.f32 %v2950_v5, %v2887_v9 }
 0x29d   : > { %4169 = vrcp.f32 %v3016_v4  ;;  %v2947_v4 = vmul.f32 %v5765_v44, %v2851_v17 }
 0x29e   : > { %v4160_v47 = vpop.eup %4159  ;;  %v3487_v41 = vmul.f32 -1.442695, %v2966_v6 }
 0x29f   : > { %v3024_v21 = vadd.f32 1.0, %v4160_v47  ;;  %v2912_v30 = vpop.trf.xlu1  ;;  %v2888_v56 = vpop.trf.xlu0  ;;  %v2853_v47 = vld [vmem:[%s5890_s3 + $0x68] sm:$0xff] }
 0x2a0   : > { %v4162_v49 = vpop.eup %4161  ;;  %4171 = vpow2.f32 %v3487_v41  ;;  %v2953_v53 = vadd.f32 %v2937_v10, %v2912_v30 }
 0x2a1   : > { %4173 = vrcp.f32 %v3024_v21  ;;  %v3020_v32 = vadd.f32 1.0, %v4162_v49 }
 0x2a2   : > { %v4164_v55 = vpop.eup %4163  ;;  %v3474_v59 = vmul.f32 -1.442695, %v2953_v53  ;;  %4175 = vtanh.f32 %v2888_v56 }
 0x2a3   : > { %4177 = vrcp.f32 %v3018_v0  ;;  %v3026_v31 = vadd.f32 1.0, %v4164_v55  ;;  %v2913_v60 = vpop.trf.xlu1  ;;  %v2889_v51 = vpop.trf.xlu0 }
 0x2a4   : > { %v4166_v14 = vpop.eup %4165  ;;  %4179 = vpow2.f32 %v3474_v59  ;;  %v2955_v19 = vadd.f32 %v2939_v46, %v2913_v60  ;;  %v2949_v59 = vmul.f32 %v5772_v20, %v2853_v47 }
 0x2a5   : > { %4181 = vrcp.f32 %v3026_v31  ;;  %v3022_v58 = vadd.f32 1.0, %v4166_v14 }
 0x2a6   : > { %v4168_v33 = vpop.eup %4167  ;;  %v3476_v42 = vmul.f32 -1.442695, %v2955_v19  ;;  %4183 = vtanh.f32 %v2889_v51  ;;  %v2855_v19 = vld [vmem:[%s5890_s3 + $0x78] sm:$0xff] }
 0x2a7   : > { %4185 = vrcp.f32 %v3020_v32  ;;  %v3028_v28 = vadd.f32 1.0, %v4168_v33  ;;  %v2914_v62 = vpop.trf.xlu1  ;;  %v2890_v1 = vpop.trf.xlu0 }
 0x2a8   : > { %4187 = vpow2.f32 %v3476_v42  ;;  %v2957_v36 = vadd.f32 %v2941_v11, %v2914_v62  ;;  %v4170_v13 = vpop.eup %4169 }
 0x2a9   : > { %4189 = vrcp.f32 %v3028_v28 }
 0x2aa   : > { %v4172_v24 = vpop.eup %4171  ;;  %v3478_v27 = vmul.f32 -1.442695, %v2957_v36  ;;  %4191 = vtanh.f32 %v2890_v1 }
 0x2ab   : > { %v4174_v39 = vpop.eup %4173  ;;  %4193 = vrcp.f32 %v3022_v58  ;;  %v3030_v2 = vadd.f32 1.0, %v4172_v24  ;;  %v2915_v25 = vpop.trf.xlu1 }
 0x2ac   : > { %v2891_v50 = vpop.trf.xlu0  ;;  %v4176_v23 = vpop.eup %4175  ;;  %4195 = vpow2.f32 %v3478_v27  ;;  %v3064_v48 = vmul.f32 %v4174_v39, %v5714_v38  ;;  %v2959_v15 = vadd.f32 %v2943_v52, %v2915_v25  ;;  %v2951_v52 = vmul.f32 %v5779_v8, %v2855_v19 }
 0x2ad   : > { %v4178_v43 = vpop.eup %4177  ;;  %4197 = vrcp.f32 %v3030_v2  ;;  %v3080_v7 = vmul.f32 %v4176_v23, %v4170_v13 }
 0x2ae   : > { %v4180_v3 = vpop.eup %4179  ;;  %4199 = vtanh.f32 %v2891_v50  ;;  %v3480_v6 = vmul.f32 -1.442695, %v2959_v15  ;;  %v2862_v50 = vld [vmem:[%s5890_s3 + $0xb0] sm:$0xff] }
 0x2af   : > { %v4182_v57 = vpop.eup %4181  ;;  %v2916_v26 = vpop.trf.xlu1  ;;  %v3088_v40 = vadd.f32 %v3080_v7, %v3064_v48  ;;  %v3017_v0 = vadd.f32 1.0, %v4180_v3 }
 0x2b0   : > { %v2892_v5 = vpop.trf.xlu0  ;;  %v4184_v22 = vpop.eup %4183  ;;  %v2961_v38 = vadd.f32 %v2945_v29, %v2916_v26  ;;  %v3066_v9 = vmul.f32 %v4182_v57, %v5721_v45  ;;  %v2858_v45 = vld [vmem:[%s5890_s3 + $0x90] sm:$0xff] }
 0x2b1   : > { %v4186_v12 = vpop.eup %4185  ;;  %v3096_v10 = vmul.f32 %v3088_v40, %v2856_v54  ;;  %3184 = vst [vmem:[%s5797_s9 + $0x40] sm:$0xff] %v3088_v40  ;;  %v3082_v18 = vmul.f32 %v4184_v22, %v4178_v43 }
 0x2b2   : > { %v4188_v41 = vpop.eup %4187  ;;  %v3482_v21 = vmul.f32 -1.442695, %v2961_v38 }
 0x2b3   : > { %v4190_v30 = vpop.eup %4189  ;;  %v3104_v56 = vadd.f32 %v3096_v10, %v2892_v5  ;;  %v2917_v49 = vpop.trf.xlu1  ;;  %v3090_v46 = vadd.f32 %v3082_v18, %v3066_v9  ;;  %v3019_v33 = vadd.f32 1.0, %v4188_v41 }
 0x2b4   : > { %v2893_v53 = vpop.trf.xlu0  ;;  %v4192_v37 = vpop.eup %4191  ;;  %4201 = vpow2.f32 %v3482_v21  ;;  %v2963_v55 = vadd.f32 %v2947_v4, %v2917_v49  ;;  %v3068_v32 = vmul.f32 %v4190_v30, %v5728_v35 }
 0x2b5   : > { %v4194_v31 = vpop.eup %4193  ;;  %4203 = vpow2.f32 %v3480_v6  ;;  %v3489_v60 = vmul.f32 -1.442695, %v3104_v56  ;;  %v3098_v51 = vmul.f32 %v3090_v46, %v2858_v45  ;;  %3186 = vst [vmem:[%s5797_s9 + $0x50] sm:$0xff] %v3090_v46  ;;  %v3084_v14 = vmul.f32 %v4192_v37, %v4186_v12 }
 0x2b6   : > { %v4196_v11 = vpop.eup %4195  ;;  %4205 = vrcp.f32 %v3017_v0  ;;  %v3484_v42 = vmul.f32 -1.442695, %v2963_v55 }
 0x2b7   : > { %v4198_v35 = vpop.eup %4197  ;;  %4207 = vpow2.f32 %v3489_v60  ;;  %v3106_v58 = vadd.f32 %v3098_v51, %v2893_v53  ;;  %v2918_v28 = vpop.trf.xlu1  ;;  %v3092_v1 = vadd.f32 %v3084_v14, %v3068_v32  ;;  %v3021_v2 = vadd.f32 1.0, %v4196_v11 }
 0x2b8   : > { %v2894_v62 = vpop.trf.xlu0  ;;  %v4200_v36 = vpop.eup %4199  ;;  %4209 = vpow2.f32 %v3484_v42  ;;  %v2965_v13 = vadd.f32 %v2949_v59, %v2918_v28  ;;  %v3070_v63 = vmul.f32 %v4198_v35, %v5738_v34 }
 0x2b9   : > { %4211 = vtanh.f32 %v3088_v40  ;;  %v3491_v24 = vmul.f32 -1.442695, %v3106_v58  ;;  %v3100_v27 = vmul.f32 %v3092_v1, %v2860_v16  ;;  %3188 = vst [vmem:[%s5797_s9 + $0x60] sm:$0xff] %v3092_v1  ;;  %v3086_v39 = vmul.f32 %v4200_v36, %v4194_v31 }
 0x2ba   : > { %4213 = vrcp.f32 %v3019_v33  ;;  %v3486_v25 = vmul.f32 -1.442695, %v2965_v13  ;;  %v2857_v33 = vld [vmem:[%s5890_s3 + $0x88] sm:$0xff] }
 0x2bb   : > { %4215 = vpow2.f32 %v3491_v24  ;;  %v3108_v23 = vadd.f32 %v3100_v27, %v2894_v62  ;;  %v2919_v29 = vpop.trf.xlu1  ;;  %v5821_v48 = vadd.f32 %v3086_v39, %v3070_v63 }
 0x2bc   : > { %4217 = vpow2.f32 %v3486_v25  ;;  %v2967_v34 = vadd.f32 %v2951_v52, %v2919_v29  ;;  %v2895_v43 = vpop.trf.xlu0  ;;  %v2859_v52 = vld [vmem:[%s5890_s3 + $0x98] sm:$0xff] }
 0x2bd   : > { %4219 = vtanh.f32 %v3090_v46  ;;  %v3493_v15 = vmul.f32 -1.442695, %v3108_v23  ;;  %v3102_v7 = vmul.f32 %v5821_v48, %v2862_v50  ;;  %3190 = vst [vmem:[%s5797_s9 + $0x70] sm:$0xff] %v5821_v48 }
 0x2be   : > { %v4202_v17 = vpop.eup %4201  ;;  %4221 = vrcp.f32 %v3021_v2  ;;  %v3488_v3 = vmul.f32 -1.442695, %v2967_v34 }
 0x2bf   : > { %v4204_v54 = vpop.eup %4203  ;;  %v3025_v57 = vadd.f32 1.0, %v4202_v17  ;;  %4223 = vpow2.f32 %v3493_v15  ;;  %v3110_v26 = vadd.f32 %v3102_v7, %v2895_v43  ;;  %v2920_v5 = vpop.trf.xlu1  ;;  %v2861_v43 = vld [vmem:[%s5890_s3 + $0xa8] sm:$0xff] }
 0x2c0   : > { %v4206_v40 = vpop.eup %4205  ;;  %4225 = vpow2.f32 %v3488_v3  ;;  %v3023_v45 = vadd.f32 1.0, %v4204_v54 }
 0x2c1   : > { %v4208_v22 = vpop.eup %4207  ;;  %4227 = vrcp.f32 %v3025_v57  ;;  %v3495_v38 = vmul.f32 -1.442695, %v3110_v26 }
 0x2c2   : > { %v4210_v4 = vpop.eup %4209  ;;  %v3136_v9 = vadd.f32 1.0, %v4208_v22  ;;  %4229 = vtanh.f32 %v2920_v5 }
 0x2c3   : > { %v4212_v12 = vpop.eup %4211  ;;  %v3027_v6 = vadd.f32 1.0, %v4210_v4  ;;  %4231 = vpow2.f32 %v3495_v38  ;;  %v2921_v10 = vpop.trf.xlu1  ;;  %v2863_v4 = vld [vmem:[%s5890_s3 + $0xb8] sm:$0xff] }
 0x2c4   : > { %v4214_v18 = vpop.eup %4213  ;;  %4233 = vrcp.f32 %v3136_v9 }
 0x2c5   : > { %v4216_v47 = vpop.eup %4215  ;;  %4235 = vrcp.f32 %v3027_v6 }
 0x2c6   : > { %v4218_v41 = vpop.eup %4217  ;;  %v3138_v0 = vadd.f32 1.0, %v4216_v47  ;;  %4237 = vtanh.f32 %v2921_v10 }
 0x2c7   : > { %v4220_v21 = vpop.eup %4219  ;;  %v3029_v30 = vadd.f32 1.0, %v4218_v41  ;;  %4239 = vtanh.f32 %v3092_v1  ;;  %v2922_v56 = vpop.trf.xlu1 }
 0x2c8   : > { %v4222_v49 = vpop.eup %4221  ;;  %4241 = vrcp.f32 %v3138_v0 }
 0x2c9   : > { %v4224_v53 = vpop.eup %4223  ;;  %4243 = vrcp.f32 %v3029_v30 }
 0x2ca   : > { %v4226_v46 = vpop.eup %4225  ;;  %v3140_v37 = vadd.f32 1.0, %v4224_v53  ;;  %4245 = vtanh.f32 %v2922_v56 }
 0x2cb   : > { %v4228_v55 = vpop.eup %4227  ;;  %4247 = vrcp.f32 %v3023_v45  ;;  %v3031_v59 = vadd.f32 1.0, %v4226_v46  ;;  %v2923_v32 = vpop.trf.xlu1 }
 0x2cc   : > { %v4230_v31 = vpop.eup %4229  ;;  %4249 = vrcp.f32 %v3140_v37  ;;  %v3065_v60 = vmul.f32 %v4228_v55, %v5758_v61 }
 0x2cd   : > { %v4232_v51 = vpop.eup %4231  ;;  %4251 = vrcp.f32 %v3031_v59  ;;  %v3081_v14 = vmul.f32 %v4230_v31, %v4206_v40 }
 0x2ce   : > { %v4234_v19 = vpop.eup %4233  ;;  %v3142_v11 = vadd.f32 1.0, %v4232_v51  ;;  %4253 = vtanh.f32 %v2923_v32 }
 0x2cf   : > { %v4236_v42 = vpop.eup %4235  ;;  %v3168_v16 = vmul.f32 %v4234_v19, %v4212_v12  ;;  %4255 = vtanh.f32 %v5821_v48  ;;  %v2924_v35 = vpop.trf.xlu1  ;;  %v3089_v58 = vadd.f32 %v3081_v14, %v3065_v60 }
 0x2d0   : > { %v4238_v28 = vpop.eup %4237  ;;  %4257 = vrcp.f32 %v3142_v11  ;;  %v3067_v61 = vmul.f32 %v4236_v42, %v5765_v44 }
 0x2d1   : > { %v4240_v62 = vpop.eup %4239  ;;  %3176 = vst [vmem:[%s5797_s9] sm:$0xff] %v3168_v16  ;;  %v3097_v1 = vmul.f32 %v3089_v58, %v2857_v33  ;;  %3185 = vst [vmem:[%s5797_s9 + $0x48] sm:$0xff] %v3089_v58  ;;  %v3083_v36 = vmul.f32 %v4238_v28, %v4214_v18 }
 0x2d2   : > { %v4242_v13 = vpop.eup %4241 }
 0x2d3   : > { %v4244_v63 = vpop.eup %4243  ;;  %v3170_v24 = vmul.f32 %v4242_v13, %v4220_v21  ;;  %v3105_v27 = vadd.f32 %v3097_v1, %v2924_v35  ;;  %v2925_v39 = vpop.trf.xlu1  ;;  %v3091_v2 = vadd.f32 %v3083_v36, %v3067_v61  ;;  %v3230_v13 = vld [vmem:[%s5797_s9 + $0x40] sm:$0xff] (%p4380_p5) }
 0x2d4   : > { %v4246_v25 = vpop.eup %4245  ;;  %v3069_v44 = vmul.f32 %v4244_v63, %v5772_v20  ;;  %3231 = vst [vmem:[%s3201_s13 + $0x80] sm:$0xff] (%p4380_p5), %v3230_v13  ;;  %v3234_v63 = vld [vmem:[%s5797_s9 + $0x50] sm:$0xff] (%p4380_p5) }
 0x2d5   : > { %v4248_v50 = vpop.eup %4247  ;;  %3178 = vst [vmem:[%s5797_s9 + $0x10] sm:$0xff] %v3170_v24  ;;  %v3490_v23 = vmul.f32 -1.442695, %v3105_v27  ;;  %v3099_v29 = vmul.f32 %v3091_v2, %v2859_v52  ;;  %3187 = vst [vmem:[%s5797_s9 + $0x58] sm:$0xff] %v3091_v2  ;;  %v3085_v48 = vmul.f32 %v4246_v25, %v4222_v49  ;;  %v3238_v27 = vld [vmem:[%s5797_s9 + $0x60] sm:$0xff] (%p4380_p5) }
 0x2d6   : > { %v4250_v34 = vpop.eup %4249  ;;  %3235 = vst [vmem:[%s3201_s13 + $0xa0] sm:$0xff] (%p4380_p5), %v3234_v63  ;;  %3239 = vst [vmem:[%s3201_s13 + $0xc0] sm:$0xff] (%p4380_p5), %v3238_v27 }
 0x2d7   : > { %v4252_v15 = vpop.eup %4251  ;;  %v3172_v7 = vmul.f32 %v4250_v34, %v4240_v62  ;;  %4259 = vpow2.f32 %v3490_v23  ;;  %v3107_v17 = vadd.f32 %v3099_v29, %v2925_v39  ;;  %v2926_v3 = vpop.trf.xlu1  ;;  %v3093_v54 = vadd.f32 %v3085_v48, %v3069_v44 }
 0x2d8   : > { %v4254_v20 = vpop.eup %4253  ;;  %v3071_v57 = vmul.f32 %v4252_v15, %v5779_v8  ;;  %v3214_v16 = vld [vmem:[%s5797_s9] sm:$0xff] (%p4380_p5)  ;;  %v3232_v52 = vld [vmem:[%s5797_s9 + $0x48] sm:$0xff] (%p4380_p5) }
 0x2d9   : > { %v4256_v26 = vpop.eup %4255  ;;  %3180 = vst [vmem:[%s5797_s9 + $0x20] sm:$0xff] %v3172_v7  ;;  %v3492_v5 = vmul.f32 -1.442695, %v3107_v17  ;;  %v3101_v40 = vmul.f32 %v3093_v54, %v2861_v43  ;;  %3189 = vst [vmem:[%s5797_s9 + $0x68] sm:$0xff] %v3093_v54  ;;  %v3087_v22 = vmul.f32 %v4254_v20, %v4248_v50 }
 0x2da   : > { %v4258_v38 = vpop.eup %4257  ;;  %3215 = vst [vmem:[%s3201_s13] sm:$0xff] (%p4380_p5), %v3214_v16  ;;  %3233 = vst [vmem:[%s3201_s13 + $0x88] sm:$0xff] (%p4380_p5), %v3232_v52 }
 0x2db   : > { %v3174_v9 = vmul.f32 %v4258_v38, %v4256_v26  ;;  %4261 = vpow2.f32 %v3492_v5  ;;  %v3109_v12 = vadd.f32 %v3101_v40, %v2926_v3  ;;  %v3095_v6 = vadd.f32 %v3087_v22, %v3071_v57  ;;  %v2927_v10 = vpop.trf.xlu1 }
 0x2dc   : > { %v3236_v24 = vld [vmem:[%s5797_s9 + $0x58] sm:$0xff] (%p4380_p5) }
 0x2dd   : > { %3182 = vst [vmem:[%s5797_s9 + $0x30] sm:$0xff] %v3174_v9  ;;  %v3494_v18 = vmul.f32 -1.442695, %v3109_v12  ;;  %v3103_v8 = vmul.f32 %v3095_v6, %v2863_v4  ;;  %3191 = vst [vmem:[%s5797_s9 + $0x78] sm:$0xff] %v3095_v6 }
 0x2de   : > { %3237 = vst [vmem:[%s3201_s13 + $0xa8] sm:$0xff] (%p4380_p5), %v3236_v24 }
 0x2df   : > { %4263 = vpow2.f32 %v3494_v18  ;;  %v3111_v47 = vadd.f32 %v3103_v8, %v2927_v10 }
 0x2e0   : > { %4265 = vtanh.f32 %v3089_v58  ;;  %v3218_v58 = vld [vmem:[%s5797_s9 + $0x10] sm:$0xff] (%p4380_p5)  ;;  %v3222_v61 = vld [vmem:[%s5797_s9 + $0x20] sm:$0xff] (%p4380_p5)  ;;  %v3240_v39 = vld [vmem:[%s5797_s9 + $0x68] sm:$0xff] (%p4380_p5) }
 0x2e1   : > { %v4260_v41 = vpop.eup %4259  ;;  %v3496_v0 = vmul.f32 -1.442695, %v3111_v47  ;;  %3219 = vst [vmem:[%s3201_s13 + $0x20] sm:$0xff] (%p4380_p5), %v3218_v58  ;;  %3223 = vst [vmem:[%s3201_s13 + $0x40] sm:$0xff] (%p4380_p5), %v3222_v61 }
 0x2e2   : > { %v3137_v21 = vadd.f32 1.0, %v4260_v41  ;;  %3241 = vst [vmem:[%s3201_s13 + $0xc8] sm:$0xff] (%p4380_p5), %v3240_v39 }
 0x2e3   : > { %4267 = vpow2.f32 %v3496_v0 }
 0x2e4   : > { %4269 = vrcp.f32 %v3137_v21  ;;  %v3226_v1 = vld [vmem:[%s5797_s9 + $0x30] sm:$0xff] (%p4380_p5)  ;;  %v3244_v25 = vld [vmem:[%s5797_s9 + $0x78] sm:$0xff] (%p4380_p5) }
 0x2e5   : > { %v4262_v45 = vpop.eup %4261  ;;  %4271 = vtanh.f32 %v3091_v2  ;;  %3227 = vst [vmem:[%s3201_s13 + $0x60] sm:$0xff] (%p4380_p5), %v3226_v1  ;;  %v3242_v2 = vld [vmem:[%s5797_s9 + $0x70] sm:$0xff] (%p4380_p5)  ;;  %3245 = vst [vmem:[%s3201_s13 + $0xe8] sm:$0xff] (%p4380_p5), %v3244_v25 }
 0x2e6   : > { %v3139_v30 = vadd.f32 1.0, %v4262_v45  ;;  %3243 = vst [vmem:[%s3201_s13 + $0xe0] sm:$0xff] (%p4380_p5), %v3242_v2 }
 0x2e8   : > { %4273 = vrcp.f32 %v3139_v30 }
 0x2e9   : > { %v4264_v56 = vpop.eup %4263  ;;  %4275 = vtanh.f32 %v3093_v54 }
 0x2ea   : > { %v3141_v49 = vadd.f32 1.0, %v4264_v56  ;;  %v4266_v53 = vpop.eup %4265 }
 0x2ec   : > { %4277 = vrcp.f32 %v3141_v49 }
 0x2ed   : > { %v4268_v46 = vpop.eup %4267  ;;  %4279 = vtanh.f32 %v3095_v6 }
 0x2ee   : > { %v4270_v37 = vpop.eup %4269  ;;  %v3143_v55 = vadd.f32 1.0, %v4268_v46 }
 0x2ef   : > { %v3169_v59 = vmul.f32 %v4270_v37, %v4266_v53  ;;  %v4272_v32 = vpop.eup %4271 }
 0x2f0   : > { %4281 = vrcp.f32 %v3143_v55 }
 0x2f1   : > { %3177 = vst [vmem:[%s5797_s9 + $0x8] sm:$0xff] %v3169_v59 }
 0x2f2   : > { %v4274_v31 = vpop.eup %4273 }
 0x2f3   : > { %v3171_v60 = vmul.f32 %v4274_v31, %v4272_v32  ;;  %v4276_v51 = vpop.eup %4275 }
 0x2f5   : > { %3179 = vst [vmem:[%s5797_s9 + $0x18] sm:$0xff] %v3171_v60 }
 0x2f6   : > { %v4278_v14 = vpop.eup %4277 }
 0x2f7   : > { %v3173_v19 = vmul.f32 %v4278_v14, %v4276_v51  ;;  %v4280_v11 = vpop.eup %4279  ;;  %3198 = sbr.rel (!%p4380_p5) target bundleno = 774 (0x306), region = 67 }
 0x2f8   : > { %v3216_v35 = vld [vmem:[%s5797_s9 + $0x8] sm:$0xff] (%p4380_p5) }
 0x2f9   : > { %3181 = vst [vmem:[%s5797_s9 + $0x28] sm:$0xff] %v3173_v19  ;;  %3217 = vst [vmem:[%s3201_s13 + $0x8] sm:$0xff] (%p4380_p5), %v3216_v35 }
 0x2fa   : > { %v4282_v33 = vpop.eup %4281 }
 0x2fb   : > { %v3175_v42 = vmul.f32 %v4282_v33, %v4280_v11 }
 0x2fc   : > { %v3220_v28 = vld [vmem:[%s5797_s9 + $0x18] sm:$0xff] (%p4380_p5) }
 0x2fd   : > { %3183 = vst [vmem:[%s5797_s9 + $0x38] sm:$0xff] %v3175_v42  ;;  %3221 = vst [vmem:[%s3201_s13 + $0x28] sm:$0xff] (%p4380_p5), %v3220_v28 }
 0x300   : > { %v3224_v62 = vld [vmem:[%s5797_s9 + $0x28] sm:$0xff] }
 0x301   : > { %3225 = vst [vmem:[%s3201_s13 + $0x48] sm:$0xff] %v3224_v62 }
 0x304   : > { %v3228_v36 = vld [vmem:[%s5797_s9 + $0x38] sm:$0xff] }
 0x305   : > { %3229 = vst [vmem:[%s3201_s13 + $0x68] sm:$0xff] %v3228_v36 }
 0x306 PF: > { %p12_p11 = scmp.ge.s32.totalorder %s4368_s22, 4   ;;  %s5926_s18 = smov %s4313_s19 }
 0x307   : > { %s5927_s19 = smov %s4378_s25  ;;  %s5928_s20 = smov %s4368_s22 }
 0x308   :  { %14 = sbr.rel (!%p12_p11) target bundleno = 2 (0x2), region = 124 }

</bundles_post_ra>
